<compile_context>
chip_gen: v6e
topology: v6e:2x2x1
jax: 0.10.0
libtpu: 0.0.40
codegen_flags: <defaults>
</compile_context>

<pallas_src>
import jax
import jax.numpy as jnp
from jax.experimental import pallas as pl
from jax.experimental.pallas import tpu as pltpu

# ---- problem sizes (small, consistent with the module's [B, C, H, W] inputs) ----
B, C, H, W = 2, 4, 16, 16
D = C * H * W          # 1024 flattened features
T_DIM = 128            # sinusoidal time-embedding width
HIDDEN = 256           # score-MLP hidden width

# VP (variance preserving) linear beta schedule constants (Song et al. 2021)
BETA_MIN = 0.1
BETA_MAX = 20.0


def _gelu(x):
    # tanh-approx GELU (tanh rides the EUP slot on TPU)
    c = 0.7978845608028654  # sqrt(2/pi)
    return 0.5 * x * (1.0 + jnp.tanh(c * (x + 0.044715 * x * x * x)))


def _vp_coeffs(t):
    # mean coeff a(t) = exp(log_mean_coeff);  var(t) = 1 - a(t)^2
    # (computing a(t) directly avoids the sqrt(1 - var) cancellation)
    lmc = -0.25 * t * t * (BETA_MAX - BETA_MIN) - 0.5 * t * BETA_MIN
    mc = jnp.exp(lmc)
    var = 1.0 - mc * mc
    return mc, var


def _vmem_spec():
    return pl.BlockSpec(memory_space=pltpu.MemorySpace.VMEM)


# ----------------------------------------------------------------------------
# Kernel 1: score network forward (VPSDE.forward / VPSDE.score)
#   out = gelu([x, temb] @ [w1; wt] + b1) @ w2 + b2      (single stacked matmul)
# ----------------------------------------------------------------------------
def score_kernel(xin_ref, w1t_ref, b1_ref, w2_ref, b2_ref, o_ref):
    h = jnp.dot(xin_ref[...].astype(jnp.bfloat16), w1t_ref[...],
                preferred_element_type=jnp.float32) + b1_ref[...]
    h = _gelu(h)
    out = jnp.dot(h.astype(jnp.bfloat16), w2_ref[...],
                  preferred_element_type=jnp.float32) + b2_ref[...]
    o_ref[...] = out.astype(o_ref.dtype)


# ----------------------------------------------------------------------------
# Kernel 2: VPSDE.noise — x_t = a(t) * x_0 + sqrt(var(t)) * prior
# ----------------------------------------------------------------------------
def noise_kernel(x0_ref, prior_ref, t_ref, o_ref):
    mc, var = _vp_coeffs(t_ref[...])                   # (B, 1), broadcast over D
    o_ref[...] = (mc * x0_ref[...]
                  + jnp.sqrt(var) * prior_ref[...]).astype(o_ref.dtype)


# ----------------------------------------------------------------------------
# Kernel 3 (fused): VPSDE.loss — noising + score MLP + DSM residual + reduction
#   0.5 * mean((estim + (noised - sample) / sigma)^2)
# ----------------------------------------------------------------------------
def loss_kernel(sample_ref, prior_ref, temb_ref, t_ref,
                w1t_ref, b1_ref, w2_ref, b2_ref, o_ref):
    mc, var = _vp_coeffs(t_ref[...])                   # (B, 1)
    sample = sample_ref[...]                           # (B, D)
    noised = mc * sample + jnp.sqrt(var) * prior_ref[...]

    # score MLP on [noised, temb] with the stacked first-layer weight
    xin = jnp.concatenate([noised, temb_ref[...]], axis=-1).astype(jnp.bfloat16)
    h = jnp.dot(xin, w1t_ref[...], preferred_element_type=jnp.float32) + b1_ref[...]
    h = _gelu(h)
    estim = jnp.dot(h.astype(jnp.bfloat16), w2_ref[...],
                    preferred_element_type=jnp.float32) + b2_ref[...]

    # denoising score matching loss
    inv_sigma = jax.lax.rsqrt(jnp.clip(var, 1e-10, 1.0))   # EUP rsqrt, no divide
    resid = estim + (noised - sample) * inv_sigma
    val = 0.5 * jnp.mean(resid * resid)
    o_ref[...] = val[None, None].astype(o_ref.dtype)


# ----------------------------------------------------------------------------
# Plain-JAX glue
# ----------------------------------------------------------------------------
def time_embedding(t, dim):
    half = dim // 2
    freqs = jnp.exp(-jnp.log(10000.0) * jnp.arange(half, dtype=jnp.float32) / half)
    args = t.astype(jnp.float32)[:, None] * freqs[None, :]
    return jnp.concatenate([jnp.sin(args), jnp.cos(args)], axis=-1)  # [B, dim]


def init_params(key):
    k1, k2, k3 = jax.random.split(key, 3)
    w1 = jax.random.normal(k1, (D, HIDDEN), jnp.float32) / jnp.sqrt(float(D))
    wt = jax.random.normal(k2, (T_DIM, HIDDEN), jnp.float32) / jnp.sqrt(float(T_DIM))
    # stacked first-layer weight: one MXU matmul over [x, temb]; stored bf16
    w1t = jnp.concatenate([w1, wt], axis=0).astype(jnp.bfloat16)   # (D+T_DIM, HIDDEN)
    b1 = jnp.zeros((1, HIDDEN), jnp.float32)
    w2 = (jax.random.normal(k3, (HIDDEN, D), jnp.float32)
          / jnp.sqrt(float(HIDDEN))).astype(jnp.bfloat16)
    b2 = jnp.zeros((1, D), jnp.float32)
    return dict(w1t=w1t, b1=b1, w2=w2, b2=b2)


@jax.jit
def vpsde_forward(params, x_t, t):
    """VPSDE.forward / VPSDE.score: x_t [B, C, H, W], t [B] -> score [B, C, H, W]."""
    b = x_t.shape[0]
    x_flat = x_t.reshape(b, D).astype(jnp.float32)
    temb = time_embedding(t, T_DIM)
    xin = jnp.concatenate([x_flat, temb], axis=-1)     # (B, D + T_DIM) = (B, 1152)
    out_flat = pl.pallas_call(
        score_kernel,
        out_shape=jax.ShapeDtypeStruct((b, D), jnp.float32),
        in_specs=[_vmem_spec()] * 5,
        out_specs=_vmem_spec(),
    )(xin, params["w1t"], params["b1"], params["w2"], params["b2"])
    return out_flat.reshape(x_t.shape).astype(x_t.dtype)


@jax.jit
def vpsde_noise(x_0, t, prior):
    """VPSDE.noise: a(t)*x_0 + sqrt(var(t))*prior, with the (t<=0).all() early return."""
    b = x_0.shape[0]

    def _noised(_):
        x_flat = x_0.reshape(b, D).astype(jnp.float32)
        p_flat = prior.reshape(b, D).astype(jnp.float32)
        t2d = t.astype(jnp.float32).reshape(b, 1)
        out = pl.pallas_call(
            noise_kernel,
            out_shape=jax.ShapeDtypeStruct((b, D), jnp.float32),
            in_specs=[_vmem_spec()] * 3,
            out_specs=_vmem_spec(),
        )(x_flat, p_flat, t2d)
        return out.reshape(x_0.shape).astype(x_0.dtype)

    # lax.cond: skip the noising pass entirely when all timesteps are <= 0
    return jax.lax.cond(jnp.all(t <= 0.0), lambda _: x_0, _noised, operand=None)


@jax.jit
def vpsde_loss(params, sample, t, prior):
    """VPSDE.loss: single fused kernel (noise + score MLP + DSM residual + mean)."""
    b = sample.shape[0]
    sample_flat = sample.reshape(b, D).astype(jnp.float32)
    prior_flat = prior.reshape(b, D).astype(jnp.float32)
    temb = time_embedding(t, T_DIM)
    t2d = t.astype(jnp.float32).reshape(b, 1)
    loss = pl.pallas_call(
        loss_kernel,
        out_shape=jax.ShapeDtypeStruct((1, 1), jnp.float32),
        in_specs=[_vmem_spec()] * 8,
        out_specs=_vmem_spec(),
    )(sample_flat, prior_flat, temb, t2d,
      params["w1t"], params["b1"], params["w2"], params["b2"])
    return loss[0, 0]


if __name__ == "__main__":
    key = jax.random.PRNGKey(0)
    kp, kx, kt, ke = jax.random.split(key, 4)

    params = init_params(kp)
    x_t = jax.random.normal(kx, (B, C, H, W), jnp.float32)
    t = jax.random.uniform(kt, (B,), jnp.float32, minval=0.05, maxval=1.0)
    prior = jax.random.normal(ke, (B, C, H, W), jnp.float32)

    # forward (score estimation) — the nn.Module's forward pass
    score = jax.block_until_ready(vpsde_forward(params, x_t, t))
    assert score.shape == x_t.shape and score.dtype == jnp.float32
    assert bool(jnp.all(jnp.isfinite(score)))

    # VP forward-diffusion noising (+ the t<=0 early-return path via lax.cond)
    noised = jax.block_until_ready(vpsde_noise(x_t, t, prior))
    assert noised.shape == x_t.shape
    noised0 = jax.block_until_ready(vpsde_noise(x_t, jnp.zeros((B,), jnp.float32), prior))
    assert bool(jnp.allclose(noised0, x_t))

    # denoising score-matching loss (scalar, fully fused kernel)
    loss = jax.block_until_ready(vpsde_loss(params, x_t, t, prior))
    assert loss.shape == () and jnp.isfinite(loss)

    # TODO(synk): the VPSDEAncestralSampler loop (1000 sequential steps over an
    # arbitrary score model) is left as host-level JAX; not expressed as a kernel.
    print("KERNEL_OK")
</pallas_src>

<mosaic_0001>
module attributes {stable_mosaic.version = 11 : i64} {
  func.func @score_kernel(%arg0: memref<2x1152xf32, #tpu.memory_space<vmem>>, %arg1: memref<1152x256xbf16, #tpu.memory_space<vmem>>, %arg2: memref<1x256xf32, #tpu.memory_space<vmem>>, %arg3: memref<256x1024xbf16, #tpu.memory_space<vmem>>, %arg4: memref<1x1024xf32, #tpu.memory_space<vmem>>, %arg5: memref<2x1024xf32, #tpu.memory_space<vmem>>) attributes {dimension_semantics = [], scalar_prefetch = 0 : i64, scratch_operands = 0 : i64, tpu.core_type = #tpu.core_type<tc>} {
    %c0 = arith.constant 0 : index
    %c0_0 = arith.constant 0 : index
    %0 = vector.load %arg0[%c0, %c0_0] : memref<2x1152xf32, #tpu.memory_space<vmem>>, vector<2x1152xf32>
    %1 = arith.truncf %0 : vector<2x1152xf32> to vector<2x1152xbf16>
    %c0_1 = arith.constant 0 : index
    %c0_2 = arith.constant 0 : index
    %2 = vector.load %arg1[%c0_1, %c0_2] : memref<1152x256xbf16, #tpu.memory_space<vmem>>, vector<1152x256xbf16>
    %cst = arith.constant dense<0.000000e+00> : vector<2x256xf32>
    %3 = tpu.matmul %1, %2, %cst {dimension_numbers = #tpu.dot_dimension_numbers<[1], [0], [0], [1], [0, 0, 1, 1], [], []>} : vector<2x1152xbf16>, vector<1152x256xbf16>, vector<2x256xf32> -> vector<2x256xf32>
    %c0_3 = arith.constant 0 : index
    %c0_4 = arith.constant 0 : index
    %4 = vector.load %arg2[%c0_3, %c0_4] : memref<1x256xf32, #tpu.memory_space<vmem>>, vector<1x256xf32>
    %5 = vector.broadcast %4 : vector<1x256xf32> to vector<2x256xf32>
    %6 = arith.addf %3, %5 : vector<2x256xf32>
    %cst_5 = arith.constant 5.000000e-01 : f32
    %7 = vector.broadcast %cst_5 : f32 to vector<2x256xf32>
    %8 = arith.mulf %7, %6 : vector<2x256xf32>
    %cst_6 = arith.constant 4.471500e-02 : f32
    %9 = vector.broadcast %cst_6 : f32 to vector<2x256xf32>
    %10 = arith.mulf %9, %6 : vector<2x256xf32>
    %11 = arith.mulf %10, %6 : vector<2x256xf32>
    %12 = arith.mulf %11, %6 : vector<2x256xf32>
    %13 = arith.addf %6, %12 : vector<2x256xf32>
    %cst_7 = arith.constant 0.797884583 : f32
    %14 = vector.broadcast %cst_7 : f32 to vector<2x256xf32>
    %15 = arith.mulf %14, %13 : vector<2x256xf32>
    %16 = math.tanh %15 : vector<2x256xf32>
    %cst_8 = arith.constant 1.000000e+00 : f32
    %17 = vector.broadcast %cst_8 : f32 to vector<2x256xf32>
    %18 = arith.addf %17, %16 : vector<2x256xf32>
    %19 = arith.mulf %8, %18 : vector<2x256xf32>
    %20 = arith.truncf %19 : vector<2x256xf32> to vector<2x256xbf16>
    %c0_9 = arith.constant 0 : index
    %c0_10 = arith.constant 0 : index
    %21 = vector.load %arg3[%c0_9, %c0_10] : memref<256x1024xbf16, #tpu.memory_space<vmem>>, vector<256x1024xbf16>
    %cst_11 = arith.constant dense<0.000000e+00> : vector<2x1024xf32>
    %22 = tpu.matmul %20, %21, %cst_11 {dimension_numbers = #tpu.dot_dimension_numbers<[1], [0], [0], [1], [0, 0, 1, 1], [], []>} : vector<2x256xbf16>, vector<256x1024xbf16>, vector<2x1024xf32> -> vector<2x1024xf32>
    %c0_12 = arith.constant 0 : index
    %c0_13 = arith.constant 0 : index
    %23 = vector.load %arg4[%c0_12, %c0_13] : memref<1x1024xf32, #tpu.memory_space<vmem>>, vector<1x1024xf32>
    %24 = vector.broadcast %23 : vector<1x1024xf32> to vector<2x1024xf32>
    %25 = arith.addf %22, %24 : vector<2x1024xf32>
    %c0_14 = arith.constant 0 : index
    %c0_15 = arith.constant 0 : index
    %26 = vector.load %arg5[%c0_14, %c0_15] : memref<2x1024xf32, #tpu.memory_space<vmem>>, vector<2x1024xf32>
    tpu.vector_store %arg5[%c0_14, %c0_15], %25 {strides = array<i32>} : memref<2x1024xf32, #tpu.memory_space<vmem>>, vector<2x1024xf32>,
    return
  }
}

</mosaic_0001>

<bundles_post_ra>
// kernel: vpsde_forward.1
= control target key start
LH: loop header
LB: loop body
LE: loop exit
PB: predicated region body
PF: predicated region fallthrough
CT: control target
= control target key end

     0   :  { %10 = vsyncpa [#allocation3], 0  ;;  %s2922_s0 = inlined_call_operand.vmem [shape: f32[2,1152], index: 0, kind: input, shape index: {}]   ;;  %s2923_s1 = inlined_call_operand.hbm [shape: bf16[1152,256], index: 1, kind: input, shape index: {}]   ;;  %s2924_s2 = inlined_call_operand.vmem [shape: f32[1,256], index: 2, kind: input, shape index: {}]   ;;  %s2925_s3 = inlined_call_operand.hbm [shape: bf16[256,1024], index: 3, kind: input, shape index: {}]   ;;  %s2926_s4 = inlined_call_operand.vmem [shape: f32[1,1024], index: 4, kind: input, shape index: {}]   ;;  %s2927_s5 = inlined_call_operand.vmem [shape: f32[2,1024], index: 5, kind: output, shape index: {}]  }
   0x1   :  { %11 = vsyncpa [#allocation5], 0  ;;  %s2788_s18 = smov [#allocation2]  }
   0x2   :  { %s19_s19 = sshll.u32 %s2788_s18, 4  ;;  %s20_s19 = int_to_ptr.vmem [resolvable:$true] %s19_s19 }
   0x3   :  { %s2752_s20 = scalar_lea.vmem %s20_s19, 18432  ;;  %p2757_p1 = scmp.lt.s32.totalorder %s20_s19, %s20_s19 }
   0x4   :  { %p2753_p0 = scmp.ne.s32.totalorder %s20_s19, %s2752_s20  ;;  %p2758_p2 = scmp.lt.s32.totalorder %s2752_s20, %s2752_s20 }
   0x6   :  { %p2759_p3 = por %p2758_p2, %p2757_p1 }
   0x8   :  { %p2760_p4 = pnand %p2759_p3, %p2753_p0 }
   0xa   :  { %2763 = shalt.err (!%p2760_p4)
}
   0xb   :  { %s2789_s21 = smov 128   ;;  %s2790_s22 = smov 8  }
   0xc   :  { %25 = dma.hbm_to_vmem [thread:$0]  %s2923_s1, 18432, %s20_s19, [#allocation3], %s2789_s21, %s2789_s21, %s2790_s22  }
   0xd   :  { %s2791_s25 = smov [#allocation4]  }
   0xe   :  { %s33_s26 = sshll.u32 %s2791_s25, 4  ;;  %s34_s26 = int_to_ptr.vmem [resolvable:$true] %s33_s26 }
   0xf   :  { %s2772_s27 = scalar_lea.vmem %s34_s26, 16384  ;;  %p2777_p6 = scmp.lt.s32.totalorder %s34_s26, %s34_s26 }
  0x10   :  { %p2773_p5 = scmp.ne.s32.totalorder %s34_s26, %s2772_s27  ;;  %p2778_p7 = scmp.lt.s32.totalorder %s2772_s27, %s2772_s27 }
  0x12   :  { %p2779_p8 = por %p2778_p7, %p2777_p6 }
  0x14   :  { %p2780_p9 = pnand %p2779_p8, %p2773_p5 }
  0x16   :  { %2783 = shalt.err (!%p2780_p9)
}
  0x17   :  { %s2792_s28 = smov 512   ;;  %s2793_s29 = smov 32  }
  0x18   :  { %39 = dma.hbm_to_vmem [thread:$0]  %s2925_s3, 16384, %s34_s26, [#allocation5], %s2792_s28, %s2792_s28, %s2793_s29  }
  0x19   :  { %2784 = dma.done.wait [#allocation3], 18432  }
  0x1a   :  { %2785 = vsyncadd [#allocation3], 4294948864 }
  0x1b   :  { %2786 = dma.done.wait [#allocation5], 16384  }
  0x1c   :  { %2787 = vsyncadd [#allocation5], 4294950912  ;;  %v2522_v0 = vld [vmem:[#allocation2 + $0x74] ss:$8 sps:$4 sm:$0xff]   ;;  %v2524_v1 = vld [vmem:[#allocation2 + $0x70] ss:$8 sps:$4 sm:$0xff]   ;;  %v59_v37 = vlaneseq }
  0x1d   :  { %990 = vmatprep.subr.bf16.mxu0 %v2522_v0  ;;  %v2525_v2 = vld [vmem:[#allocation2 + $0x174] ss:$8 sps:$4 sm:$0xff]   ;;  %v2527_v3 = vld [vmem:[#allocation2 + $0x170] ss:$8 sps:$4 sm:$0xff]   ;;  %v2528_v4 = vld [vmem:[#allocation2 + $0x64] ss:$8 sps:$4 sm:$0xff]  }
  0x1e   :  { %991 = vmatpush1.bf16.msra.mxu0 %v2524_v1  ;;  %v2530_v5 = vld [vmem:[#allocation2 + $0x60] ss:$8 sps:$4 sm:$0xff]   ;;  %1031 = vmatprep.subr.bf16.mxu1 %v2525_v2  ;;  %v2531_v6 = vld [vmem:[#allocation2 + $0x164] ss:$8 sps:$4 sm:$0xff]   ;;  %v2534_v8 = vld [vmem:[#allocation2 + $0x54] ss:$8 sps:$4 sm:$0xff]  }
  0x1f   :  { %1032 = vmatpush1.bf16.msra.mxu1 %v2527_v3  ;;  %992 = vmatprep.subr.bf16.mxu0 %v2528_v4  ;;  %v2533_v7 = vld [vmem:[#allocation2 + $0x160] ss:$8 sps:$4 sm:$0xff]   ;;  %v2536_v9 = vld [vmem:[#allocation2 + $0x50] ss:$8 sps:$4 sm:$0xff]   ;;  %v2537_v10 = vld [vmem:[#allocation2 + $0x154] ss:$8 sps:$4 sm:$0xff]  }
  0x20   :  { %1033 = vmatprep.subr.bf16.mxu1 %v2531_v6  ;;  %v2540_v11 = vld [vmem:[#allocation2 + $0x44] ss:$8 sps:$4 sm:$0xff]   ;;  %v2539_v12 = vld [vmem:[#allocation2 + $0x150] ss:$8 sps:$4 sm:$0xff]   ;;  %v2542_v14 = vld [vmem:[#allocation2 + $0x40] ss:$8 sps:$4 sm:$0xff]  }
  0x21   :  { %v2543_v13 = vld [vmem:[#allocation2 + $0x144] ss:$8 sps:$4 sm:$0xff]   ;;  %v2546_v15 = vld [vmem:[#allocation2 + $0x34] ss:$8 sps:$4 sm:$0xff]   ;;  %v2545_v16 = vld [vmem:[#allocation2 + $0x140] ss:$8 sps:$4 sm:$0xff]  }
  0x22   :  { %993 = vmatpush1.bf16.msra.mxu0 %v2530_v5  ;;  %v2549_v17 = vld [vmem:[#allocation2 + $0x134] ss:$8 sps:$4 sm:$0xff]   ;;  %v2548_v18 = vld [vmem:[#allocation2 + $0x30] ss:$8 sps:$4 sm:$0xff]   ;;  %v2552_v19 = vld [vmem:[#allocation2 + $0x24] ss:$8 sps:$4 sm:$0xff]  }
  0x23   :  { %994 = vmatprep.subr.bf16.mxu0 %v2534_v8  ;;  %1034 = vmatpush1.bf16.msra.mxu1 %v2533_v7  ;;  %v2551_v20 = vld [vmem:[#allocation2 + $0x130] ss:$8 sps:$4 sm:$0xff]   ;;  %v2555_v21 = vld [vmem:[#allocation2 + $0x124] ss:$8 sps:$4 sm:$0xff]   ;;  %v2554_v22 = vld [vmem:[#allocation2 + $0x20] ss:$8 sps:$4 sm:$0xff]  }
  0x24   :  { %1035 = vmatprep.subr.bf16.mxu1 %v2537_v10  ;;  %v2558_v23 = vld [vmem:[#allocation2 + $0x14] ss:$8 sps:$4 sm:$0xff]   ;;  %v2557_v24 = vld [vmem:[#allocation2 + $0x120] ss:$8 sps:$4 sm:$0xff]   ;;  %v2560_v26 = vld [vmem:[#allocation2 + $0x10] ss:$8 sps:$4 sm:$0xff]  }
  0x25   :  { %v2561_v25 = vld [vmem:[#allocation2 + $0x114] ss:$8 sps:$4 sm:$0xff]   ;;  %v2564_v27 = vld [vmem:[#allocation2 + $0x4] ss:$8 sps:$4 sm:$0xff]   ;;  %v2563_v28 = vld [vmem:[#allocation2 + $0x110] ss:$8 sps:$4 sm:$0xff]  }
  0x26   :  { %995 = vmatpush1.bf16.msra.mxu0 %v2536_v9  ;;  %v2567_v29 = vld [vmem:[#allocation2 + $0x104] ss:$8 sps:$4 sm:$0xff]   ;;  %v2566_v30 = vld [vmem:[#allocation2] ss:$8 sps:$4 sm:$0xff]   ;;  %v2570_v31 = vld [vmem:[#allocation2 + $0xf4] ss:$8 sps:$4 sm:$0xff]  }
  0x27   :  { %996 = vmatprep.subr.bf16.mxu0 %v2540_v11  ;;  %1036 = vmatpush1.bf16.msra.mxu1 %v2539_v12  ;;  %v2569_v32 = vld [vmem:[#allocation2 + $0x100] ss:$8 sps:$4 sm:$0xff]   ;;  %v2573_v33 = vld [vmem:[#allocation2 + $0x1f4] ss:$8 sps:$4 sm:$0xff]   ;;  %v2572_v34 = vld [vmem:[#allocation2 + $0xf0] ss:$8 sps:$4 sm:$0xff]  }
  0x28   :  { %1037 = vmatprep.subr.bf16.mxu1 %v2543_v13  ;;  %v2794_v35 = vmov 1983009808   ;;  %v2576_v38 = vld [vmem:[#allocation2 + $0xe4] ss:$8 sps:$4 sm:$0xff]   ;;  %v2575_v39 = vld [vmem:[#allocation2 + $0x1f0] ss:$8 sps:$4 sm:$0xff]  }
  0x29   :  { %v57_v36 = vunpack.c.l.s4 %v2794_v35  ;;  %v2579_v40 = vld [vmem:[#allocation2 + $0x1e4] ss:$8 sps:$4 sm:$0xff]   ;;  %v2578_v41 = vld [vmem:[#allocation2 + $0xe0] ss:$8 sps:$4 sm:$0xff]   ;;  %v2832_v43 = vshrl.u32 %v59_v37, 7 }
  0x2a   :  { %997 = vmatpush1.bf16.msra.mxu0 %v2542_v14  ;;  %v2582_v44 = vld [vmem:[#allocation2 + $0xd4] ss:$8 sps:$4 sm:$0xff]   ;;  %v2581_v45 = vld [vmem:[#allocation2 + $0x1e0] ss:$8 sps:$4 sm:$0xff]   ;;  %v2584_v47 = vld [vmem:[#allocation2 + $0xd0] ss:$8 sps:$4 sm:$0xff]  }
  0x2b   :  { %998 = vmatprep.subr.bf16.mxu0 %v2546_v15  ;;  %1038 = vmatpush1.bf16.msra.mxu1 %v2545_v16  ;;  %v58_v42 = vunpack.c.0.s8 %v57_v36  ;;  %v2585_v46 = vld [vmem:[#allocation2 + $0x1d4] ss:$8 sps:$4 sm:$0xff]   ;;  %v2588_v49 = vld [vmem:[#allocation2 + $0xc4] ss:$8 sps:$4 sm:$0xff]   ;;  %v2587_v50 = vld [vmem:[#allocation2 + $0x1d0] ss:$8 sps:$4 sm:$0xff]  }
  0x2c   :  { %1039 = vmatprep.subr.bf16.mxu1 %v2549_v17  ;;  %v2591_v51 = vld [vmem:[#allocation2 + $0x1c4] ss:$8 sps:$4 sm:$0xff]   ;;  %v2590_v53 = vld [vmem:[#allocation2 + $0xc0] ss:$8 sps:$4 sm:$0xff]   ;;  %v2594_v56 = vld [vmem:[#allocation2 + $0xb4] ss:$8 sps:$4 sm:$0xff]  }
  0x2d   :  { %v2835_v48 = vsub.s32 %v58_v42, %v2832_v43  ;;  %v49_v52 = vld [vmem:[%s2922_s0] sm:$0xff]  ;;  %v2597_v60 = vld [vmem:[#allocation2 + $0x1b4] ss:$8 sps:$4 sm:$0xff]   ;;  %v2596_v61 = vld [vmem:[#allocation2 + $0xb0] ss:$8 sps:$4 sm:$0xff]  }
  0x2e   :  { %999 = vmatpush1.bf16.msra.mxu0 %v2548_v18  ;;  %v55_v55 = vcombine.high %v49_v52, %v49_v52  ;;  %v2593_v57 = vld [vmem:[#allocation2 + $0x1c0] ss:$8 sps:$4 sm:$0xff]   ;;  %v2600_v0 = vld [vmem:[#allocation2 + $0xa4] ss:$8 sps:$4 sm:$0xff]   ;;  %v2599_v1 = vld [vmem:[#allocation2 + $0x1b0] ss:$8 sps:$4 sm:$0xff]  }
  0x2f   :  { %1000 = vmatprep.subr.bf16.mxu0 %v2552_v19  ;;  %1040 = vmatpush1.bf16.msra.mxu1 %v2551_v20  ;;  %v62_v54 = vrot.slane %v49_v52, %v2835_v48  ;;  %v2603_v3 = vld [vmem:[#allocation2 + $0x1a4] ss:$8 sps:$4 sm:$0xff]   ;;  %v2602_v4 = vld [vmem:[#allocation2 + $0xa0] ss:$8 sps:$4 sm:$0xff]   ;;  %v2606_v5 = vld [vmem:[#allocation2 + $0x94] ss:$8 sps:$4 sm:$0xff]  }
  0x30   :  { %1041 = vmatprep.subr.bf16.mxu1 %v2555_v21  ;;  %v69_v59 = vrot.slane %v55_v55, %v2835_v48  ;;  %v2605_v6 = vld [vmem:[#allocation2 + $0x1a0] ss:$8 sps:$4 sm:$0xff]   ;;  %v2609_v7 = vld [vmem:[#allocation2 + $0x194] ss:$8 sps:$4 sm:$0xff]   ;;  %v2608_v8 = vld [vmem:[#allocation2 + $0x90] ss:$8 sps:$4 sm:$0xff]  }
  0x31   :  { %v70_v58 = vcombine.high %v62_v54, %v62_v54  ;;  %v2612_v9 = vld [vmem:[#allocation2 + $0x84] ss:$8 sps:$4 sm:$0xff]   ;;  %v2611_v10 = vld [vmem:[#allocation2 + $0x190] ss:$8 sps:$4 sm:$0xff]   ;;  %v2614_v12 = vld [vmem:[#allocation2 + $0x80] ss:$8 sps:$4 sm:$0xff]   ;;  %v105_v15 = vpack.c.bf16 %v62_v54, %v62_v54 }
  0x32   :  { %1001 = vmatpush1.bf16.msra.mxu0 %v2554_v22  ;;  %v71_v63 = vcombine.high %v69_v59, %v69_v59  ;;  %v2615_v11 = vld [vmem:[#allocation2 + $0x184] ss:$8 sps:$4 sm:$0xff]   ;;  %v2620_v13 = vld [vmem:[#allocation2 + $0x274] ss:$8 sps:$4 sm:$0xff]   ;;  %v2617_v14 = vld [vmem:[#allocation2 + $0x180] ss:$8 sps:$4 sm:$0xff]   ;;  %v107_v18 = vpack.c.bf16 %v69_v59, %v69_v59 }
  0x33   :  { %1002 = vmatprep.subr.bf16.mxu0 %v2558_v23  ;;  %1042 = vmatpush1.bf16.msra.mxu1 %v2557_v24  ;;  %v106_v62 = vpack.c.bf16 %v70_v58, %v70_v58  ;;  %v2624_v16 = vld [vmem:[#allocation2 + $0x374] ss:$8 sps:$4 sm:$0xff]   ;;  %v2618_v17 = vld [vmem:[#allocation2 + $0x270] ss:$8 sps:$4 sm:$0xff]   ;;  %v2627_v19 = vld [vmem:[#allocation2 + $0x264] ss:$8 sps:$4 sm:$0xff]  }
  0x34   :  { %1043 = vmatprep.subr.bf16.mxu1 %v2561_v25  ;;  %v108_v2 = vpack.c.bf16 %v71_v63, %v71_v63  ;;  %v2622_v20 = vld [vmem:[#allocation2 + $0x370] ss:$8 sps:$4 sm:$0xff]   ;;  %v2630_v21 = vld [vmem:[#allocation2 + $0x364] ss:$8 sps:$4 sm:$0xff]   ;;  %v2625_v22 = vld [vmem:[#allocation2 + $0x260] ss:$8 sps:$4 sm:$0xff]  }
  0x35   :  { %1022 = vmatprep.mubr.bf16.mxu0 %v106_v62  ;;  %v2633_v23 = vld [vmem:[#allocation2 + $0x254] ss:$8 sps:$4 sm:$0xff]   ;;  %v2628_v24 = vld [vmem:[#allocation2 + $0x360] ss:$8 sps:$4 sm:$0xff]   ;;  %v2651_v35 = vld [vmem:[#allocation2 + $0x224] ss:$8 sps:$4 sm:$0xff]  }
  0x36   :  { %1003 = vmatpush1.bf16.msra.mxu0 %v2560_v26  ;;  %1063 = vmatprep.mubr.bf16.mxu1 %v108_v2  ;;  %v2636_v25 = vld [vmem:[#allocation2 + $0x354] ss:$8 sps:$4 sm:$0xff]   ;;  %v2631_v26 = vld [vmem:[#allocation2 + $0x250] ss:$8 sps:$4 sm:$0xff]   ;;  %v2654_v37 = vld [vmem:[#allocation2 + $0x324] ss:$8 sps:$4 sm:$0xff]  }
  0x37   :  { %1004 = vmatprep.subr.bf16.mxu0 %v2564_v27  ;;  %1044 = vmatpush1.bf16.msra.mxu1 %v2563_v28  ;;  %v2639_v27 = vld [vmem:[#allocation2 + $0x244] ss:$8 sps:$4 sm:$0xff]   ;;  %v2634_v28 = vld [vmem:[#allocation2 + $0x350] ss:$8 sps:$4 sm:$0xff]   ;;  %v2660_v42 = vld [vmem:[#allocation2 + $0x314] ss:$8 sps:$4 sm:$0xff]  }
  0x38   :  { %1045 = vmatprep.subr.bf16.mxu1 %v2567_v29  ;;  %v2642_v29 = vld [vmem:[#allocation2 + $0x344] ss:$8 sps:$4 sm:$0xff]   ;;  %v2646_v36 = vld [vmem:[#allocation2 + $0x330] ss:$8 sps:$4 sm:$0xff]   ;;  %v2661_v55 = vld [vmem:[#allocation2 + $0x200] ss:$8 sps:$4 sm:$0xff]  }
  0x39   :  { %v2666_v52 = vld [vmem:[#allocation2 + $0x304] ss:$8 sps:$4 sm:$0xff]   ;;  %v2664_v58 = vld [vmem:[#allocation2 + $0x300] ss:$8 sps:$4 sm:$0xff]   ;;  %v2672_v59 = vld [vmem:[#allocation2 + $0x3f4] ss:$8 sps:$4 sm:$0xff]  }
  0x3a   :  { %1005 = vmatpush1.bf16.msra.mxu0 %v2566_v30  ;;  %v2637_v30 = vld [vmem:[#allocation2 + $0x240] ss:$8 sps:$4 sm:$0xff]   ;;  %v2670_v62 = vld [vmem:[#allocation2 + $0x3f0] ss:$8 sps:$4 sm:$0xff]   ;;  %v2678_v63 = vld [vmem:[#allocation2 + $0x3e4] ss:$8 sps:$4 sm:$0xff]  }
  0x3b   :  { %1006 = vmatprep.subr.bf16.mxu0 %v2570_v31  ;;  %1046 = vmatpush1.bf16.msra.mxu1 %v2569_v32  ;;  %v2645_v31 = vld [vmem:[#allocation2 + $0x234] ss:$8 sps:$4 sm:$0xff]   ;;  %v2640_v32 = vld [vmem:[#allocation2 + $0x340] ss:$8 sps:$4 sm:$0xff]  }
  0x3c   :  { %1047 = vmatprep.subr.bf16.mxu1 %v2573_v33  ;;  %v2648_v33 = vld [vmem:[#allocation2 + $0x334] ss:$8 sps:$4 sm:$0xff]   ;;  %v2676_v2 = vld [vmem:[#allocation2 + $0x3e0] ss:$8 sps:$4 sm:$0xff]  }
  0x3e   :  { %1007 = vmatpush2.bf16.msra.mxu0 %v2572_v34  ;;  %v2643_v34 = vld [vmem:[#allocation2 + $0x230] ss:$8 sps:$4 sm:$0xff]  }
  0x3f   :  { %1008 = vmatprep.subr.bf16.mxu0 %v2576_v38  ;;  %1048 = vmatpush2.bf16.msra.mxu1 %v2575_v39  ;;  %v2649_v38 = vld [vmem:[#allocation2 + $0x220] ss:$8 sps:$4 sm:$0xff]   ;;  %v2657_v39 = vld [vmem:[#allocation2 + $0x214] ss:$8 sps:$4 sm:$0xff]  }
  0x40   :  { %1049 = vmatprep.subr.bf16.mxu1 %v2579_v40  ;;  %v2652_v40 = vld [vmem:[#allocation2 + $0x320] ss:$8 sps:$4 sm:$0xff]  }
  0x42   :  { %1009 = vmatpush2.bf16.msra.mxu0 %v2578_v41  ;;  %v50_v41 = vld [vmem:[%s2922_s0 + $0x8] sm:$0xff] }
  0x43   :  { %1010 = vmatprep.subr.bf16.mxu0 %v2582_v44  ;;  %1050 = vmatpush2.bf16.msra.mxu1 %v2581_v45  ;;  %v2846_v44 = vrot.slane %v50_v41, %v2835_v48  ;;  %v72_v45 = vcombine.high %v50_v41, %v50_v41  ;;  %v2736_v41 = vld [vmem:[#allocation2 + $0x414] ss:$8 sps:$4 sm:$0xff]  }
  0x44   :  { %1051 = vmatprep.subr.bf16.mxu1 %v2585_v46  ;;  %v2655_v46 = vld [vmem:[#allocation2 + $0x210] ss:$8 sps:$4 sm:$0xff]  }
  0x46   :  { %1011 = vmatpush2.bf16.msra.mxu0 %v2584_v47  ;;  %v2663_v47 = vld [vmem:[#allocation2 + $0x204] ss:$8 sps:$4 sm:$0xff]  }
  0x47   :  { %1012 = vmatprep.subr.bf16.mxu0 %v2588_v49  ;;  %1052 = vmatpush2.bf16.msra.mxu1 %v2587_v50  ;;  %v87_v49 = vcombine.high %v2846_v44, %v2846_v44  ;;  %v2851_v50 = vrot.slane %v72_v45, %v2835_v48  ;;  %v2737_v45 = vld [vmem:[#allocation2 + $0x400] ss:$8 sps:$4 sm:$0xff]  }
  0x48   :  { %1053 = vmatprep.subr.bf16.mxu1 %v2591_v51  ;;  %v2658_v51 = vld [vmem:[#allocation2 + $0x310] ss:$8 sps:$4 sm:$0xff]  }
  0x49   :  { %v88_v54 = vcombine.high %v2851_v50, %v2851_v50 }
  0x4a   :  { %1013 = vmatpush2.bf16.msra.mxu0 %v2590_v53  ;;  %v110_v53 = vpack.c.bf16 %v87_v49, %v87_v49  ;;  %v1271_v49 = vld [vmem:[#allocation4 + $0x1c0] sm:$0xff] }
  0x4b   :  { %1014 = vmatprep.subr.bf16.mxu0 %v2594_v56  ;;  %1054 = vmatpush2.bf16.msra.mxu1 %v2593_v57  ;;  %v2669_v56 = vld [vmem:[#allocation2 + $0x2f4] ss:$8 sps:$4 sm:$0xff]   ;;  %v112_v57 = vpack.c.bf16 %v88_v54, %v88_v54 }
  0x4c   :  { %1055 = vmatprep.subr.bf16.mxu1 %v2597_v60  ;;  %v2667_v60 = vld [vmem:[#allocation2 + $0x2f0] ss:$8 sps:$4 sm:$0xff]  }
  0x4e   :  { %1015 = vmatpush2.bf16.msra.mxu0 %v2596_v61  ;;  %v2675_v61 = vld [vmem:[#allocation2 + $0x2e4] ss:$8 sps:$4 sm:$0xff]  }
  0x4f   :  { %1016 = vmatprep.subr.bf16.mxu0 %v2600_v0  ;;  %1056 = vmatpush2.bf16.msra.mxu1 %v2599_v1  ;;  %v2673_v0 = vld [vmem:[#allocation2 + $0x2e0] ss:$8 sps:$4 sm:$0xff]   ;;  %v2681_v1 = vld [vmem:[#allocation2 + $0x2d4] ss:$8 sps:$4 sm:$0xff]  }
  0x50   :  { %1057 = vmatprep.subr.bf16.mxu1 %v2603_v3  ;;  %v2684_v3 = vld [vmem:[#allocation2 + $0x3d4] ss:$8 sps:$4 sm:$0xff]  }
  0x52   :  { %1017 = vmatpush2.bf16.msra.mxu0 %v2602_v4  ;;  %v2679_v4 = vld [vmem:[#allocation2 + $0x2d0] ss:$8 sps:$4 sm:$0xff]  }
  0x53   :  { %1018 = vmatprep.subr.bf16.mxu0 %v2606_v5  ;;  %1058 = vmatpush2.bf16.msra.mxu1 %v2605_v6  ;;  %v2687_v5 = vld [vmem:[#allocation2 + $0x2c4] ss:$8 sps:$4 sm:$0xff]   ;;  %v2682_v6 = vld [vmem:[#allocation2 + $0x3d0] ss:$8 sps:$4 sm:$0xff]  }
  0x54   :  { %1059 = vmatprep.subr.bf16.mxu1 %v2609_v7  ;;  %v2690_v7 = vld [vmem:[#allocation2 + $0x3c4] ss:$8 sps:$4 sm:$0xff]  }
  0x56   :  { %1019 = vmatpush2.bf16.msra.mxu0 %v2608_v8  ;;  %v2685_v8 = vld [vmem:[#allocation2 + $0x2c0] ss:$8 sps:$4 sm:$0xff]  }
  0x57   :  { %1020 = vmatprep.subr.bf16.mxu0 %v2612_v9  ;;  %1060 = vmatpush2.bf16.msra.mxu1 %v2611_v10  ;;  %v2693_v9 = vld [vmem:[#allocation2 + $0x2b4] ss:$8 sps:$4 sm:$0xff]   ;;  %v2688_v10 = vld [vmem:[#allocation2 + $0x3c0] ss:$8 sps:$4 sm:$0xff]  }
  0x58   :  { %1061 = vmatprep.subr.bf16.mxu1 %v2615_v11  ;;  %v2696_v11 = vld [vmem:[#allocation2 + $0x3b4] ss:$8 sps:$4 sm:$0xff]  }
  0x5a   :  { %1021 = vmatpush2.bf16.msra.mxu0 %v2614_v12  ;;  %v2691_v12 = vld [vmem:[#allocation2 + $0x2b0] ss:$8 sps:$4 sm:$0xff]  }
  0x5b   :  { %1072 = vmatprep.subr.bf16.mxu0 %v2620_v13  ;;  %1062 = vmatpush2.bf16.msra.mxu1 %v2617_v14  ;;  %v2699_v13 = vld [vmem:[#allocation2 + $0x2a4] ss:$8 sps:$4 sm:$0xff]   ;;  %v2694_v14 = vld [vmem:[#allocation2 + $0x3b0] ss:$8 sps:$4 sm:$0xff]  }
  0x5c   :  { %1113 = vmatprep.subr.bf16.mxu1 %v2624_v16  ;;  %v2697_v16 = vld [vmem:[#allocation2 + $0x2a0] ss:$8 sps:$4 sm:$0xff]  }
  0x5d   :  { %1023 = vmatmul.mubr.bf16.vlgmr.msra.gmra.mxu0 %v105_v15  ;;  %v2702_v15 = vld [vmem:[#allocation2 + $0x3a4] ss:$8 sps:$4 sm:$0xff]  }
  0x5e   :  { %1073 = vmatpush1.bf16.msra.mxu0 %v2618_v17  ;;  %1064 = vmatmul.mubr.bf16.vlgmr.msra.gmra.mxu1 %v107_v18  ;;  %v2705_v17 = vld [vmem:[#allocation2 + $0x294] ss:$8 sps:$4 sm:$0xff]   ;;  %v2700_v18 = vld [vmem:[#allocation2 + $0x3a0] ss:$8 sps:$4 sm:$0xff]  }
  0x5f   :  { %1074 = vmatprep.subr.bf16.mxu0 %v2627_v19  ;;  %1114 = vmatpush1.bf16.msra.mxu1 %v2622_v20  ;;  %v2708_v19 = vld [vmem:[#allocation2 + $0x394] ss:$8 sps:$4 sm:$0xff]   ;;  %v2703_v20 = vld [vmem:[#allocation2 + $0x290] ss:$8 sps:$4 sm:$0xff]  }
  0x60   :  { %1115 = vmatprep.subr.bf16.mxu1 %v2630_v21  ;;  %1104 = vmatprep.mubr.bf16.mxu0 %v110_v53  ;;  %v2711_v21 = vld [vmem:[#allocation2 + $0x284] ss:$8 sps:$4 sm:$0xff]  }
  0x61   :  { %1145 = vmatprep.mubr.bf16.mxu1 %v112_v57  ;;  %v1276_v53 = vld [vmem:[#allocation4 + $0x1e8] sm:$0xff]  ;;  %v1263_v57 = vld [vmem:[#allocation4 + $0x180] sm:$0xff] }
  0x62   :  { %1075 = vmatpush1.bf16.msra.mxu0 %v2625_v22  ;;  %v2706_v22 = vld [vmem:[#allocation2 + $0x390] ss:$8 sps:$4 sm:$0xff]  }
  0x63   :  { %1076 = vmatprep.subr.bf16.mxu0 %v2633_v23  ;;  %1116 = vmatpush1.bf16.msra.mxu1 %v2628_v24  ;;  %v2714_v23 = vld [vmem:[#allocation2 + $0x384] ss:$8 sps:$4 sm:$0xff]   ;;  %v2709_v24 = vld [vmem:[#allocation2 + $0x280] ss:$8 sps:$4 sm:$0xff]  }
  0x64   :  { %1117 = vmatprep.subr.bf16.mxu1 %v2636_v25  ;;  %v2717_v25 = vld [vmem:[#allocation2 + $0x474] ss:$8 sps:$4 sm:$0xff]  }
  0x66   :  { %1077 = vmatpush1.bf16.msra.mxu0 %v2631_v26  ;;  %v2712_v26 = vld [vmem:[#allocation2 + $0x380] ss:$8 sps:$4 sm:$0xff]  }
  0x67   :  { %1078 = vmatprep.subr.bf16.mxu0 %v2639_v27  ;;  %1118 = vmatpush1.bf16.msra.mxu1 %v2634_v28  ;;  %v109_v27 = vpack.c.bf16 %v2846_v44, %v2846_v44  ;;  %v2715_v28 = vld [vmem:[#allocation2 + $0x470] ss:$8 sps:$4 sm:$0xff]   ;;  %v2739_v44 = vld [vmem:[#allocation2 + $0x404] ss:$8 sps:$4 sm:$0xff]  }
  0x68   :  { %1119 = vmatprep.subr.bf16.mxu1 %v2642_v29  ;;  %v111_v29 = vpack.c.bf16 %v2851_v50, %v2851_v50  ;;  %v1275_v50 = vld [vmem:[#allocation4 + $0x1e0] sm:$0xff] }
  0x69   :  { %v2442_v54 = vcombine.low %v1271_v49, %v1275_v50 }
  0x6a   :  { %1079 = vmatpush1.bf16.msra.mxu0 %v2637_v30  ;;  %v2721_v30 = vld [vmem:[#allocation2 + $0x464] ss:$8 sps:$4 sm:$0xff]  }
  0x6b   :  { %1080 = vmatprep.subr.bf16.mxu0 %v2645_v31  ;;  %1120 = vmatpush1.bf16.msra.mxu1 %v2640_v32  ;;  %v2719_v31 = vld [vmem:[#allocation2 + $0x460] ss:$8 sps:$4 sm:$0xff]   ;;  %v2795_v32 = vmov 0  }
  0x6c   :  { %1121 = vmatprep.subr.bf16.mxu1 %v2648_v33  ;;  %v2724_v33 = vld [vmem:[#allocation2 + $0x454] ss:$8 sps:$4 sm:$0xff]  }
  0x6e   :  { %1081 = vmatpush1.bf16.msra.mxu0 %v2643_v34  ;;  %v2722_v34 = vld [vmem:[#allocation2 + $0x450] ss:$8 sps:$4 sm:$0xff]  }
  0x6f   :  { %1082 = vmatprep.subr.bf16.mxu0 %v2651_v35  ;;  %1122 = vmatpush1.bf16.msra.mxu1 %v2646_v36  ;;  %v2727_v35 = vld [vmem:[#allocation2 + $0x444] ss:$8 sps:$4 sm:$0xff]   ;;  %v2725_v36 = vld [vmem:[#allocation2 + $0x440] ss:$8 sps:$4 sm:$0xff]  }
  0x70   :  { %1123 = vmatprep.subr.bf16.mxu1 %v2654_v37  ;;  %v2730_v37 = vld [vmem:[#allocation2 + $0x434] ss:$8 sps:$4 sm:$0xff]  }
  0x72   :  { %1083 = vmatpush1.bf16.msra.mxu0 %v2649_v38  ;;  %v2728_v38 = vld [vmem:[#allocation2 + $0x430] ss:$8 sps:$4 sm:$0xff]  }
  0x73   :  { %1084 = vmatprep.subr.bf16.mxu0 %v2657_v39  ;;  %1124 = vmatpush1.bf16.msra.mxu1 %v2652_v40  ;;  %v2733_v39 = vld [vmem:[#allocation2 + $0x424] ss:$8 sps:$4 sm:$0xff]   ;;  %v2731_v40 = vld [vmem:[#allocation2 + $0x420] ss:$8 sps:$4 sm:$0xff]  }
  0x74   :  { %1125 = vmatprep.subr.bf16.mxu1 %v2660_v42  ;;  %v2734_v42 = vld [vmem:[#allocation2 + $0x410] ss:$8 sps:$4 sm:$0xff]  }
  0x76   :  { %1085 = vmatpush1.bf16.msra.mxu0 %v2655_v46  ;;  %v2241_v46 = vld.sshfl [vmem:[%s2922_s0 + $0x10] sm:$0x3 pattern:$0x76325410] }
  0x77   :  { %1086 = vmatprep.subr.bf16.mxu0 %v2663_v47  ;;  %1126 = vmatpush1.bf16.msra.mxu1 %v2658_v51  ;;  %v113_v47 = vpack.c.bf16 %v2241_v46, %v2241_v46  ;;  %v1272_v51 = vld [vmem:[#allocation4 + $0x1c8] sm:$0xff] }
  0x78   :  { %1127 = vmatprep.subr.bf16.mxu1 %v2666_v52  ;;  %v2443_v52 = vcombine.high %v1271_v49, %v1275_v50 }
  0x7a   :  { %1087 = vmatpush1.bf16.msra.mxu0 %v2661_v55  ;;  %v2444_v55 = vcombine.low %v1272_v51, %v1276_v53 }
  0x7b   :  { %1088 = vmatprep.subr.bf16.mxu0 %v2669_v56  ;;  %1128 = vmatpush1.bf16.msra.mxu1 %v2664_v58  ;;  %v2445_v56 = vcombine.high %v1272_v51, %v1276_v53  ;;  %v1267_v58 = vld [vmem:[#allocation4 + $0x1a0] sm:$0xff]  ;;  %v1336_v53 = vld [vmem:[#allocation4 + $0x3c8] sm:$0xff] }
  0x7c   :  { %1129 = vmatprep.subr.bf16.mxu1 %v2672_v59  ;;  %v1264_v59 = vld [vmem:[#allocation4 + $0x188] sm:$0xff]  ;;  %v1335_v51 = vld [vmem:[#allocation4 + $0x3c0] sm:$0xff] }
  0x7e   :  { %1089 = vmatpush2.bf16.msra.mxu0 %v2667_v60  ;;  %v2435_v60 = vcombine.high %v1263_v57, %v1267_v58 }
  0x7f   :  { %1090 = vmatprep.subr.bf16.mxu0 %v2675_v61  ;;  %1130 = vmatpush2.bf16.msra.mxu1 %v2670_v62  ;;  %v1268_v61 = vld [vmem:[#allocation4 + $0x1a8] sm:$0xff]  ;;  %v2434_v62 = vcombine.low %v1263_v57, %v1267_v58 }
  0x80   :  { %1131 = vmatprep.subr.bf16.mxu1 %v2678_v63  ;;  %v2436_v63 = vcombine.low %v1264_v59, %v1268_v61 }
  0x82   :  { %1091 = vmatpush2.bf16.msra.mxu0 %v2673_v0  ;;  %v2437_v0 = vcombine.high %v1264_v59, %v1268_v61  ;;  %v1327_v59 = vld [vmem:[#allocation4 + $0x380] sm:$0xff]  ;;  %v1328_v61 = vld [vmem:[#allocation4 + $0x388] sm:$0xff] }
  0x83   :  { %1092 = vmatprep.subr.bf16.mxu0 %v2681_v1  ;;  %1132 = vmatpush2.bf16.msra.mxu1 %v2676_v2  ;;  %v1255_v1 = vld [vmem:[#allocation4 + $0x140] sm:$0xff] }
  0x84   :  { %1133 = vmatprep.subr.bf16.mxu1 %v2684_v3  ;;  %v1259_v2 = vld [vmem:[#allocation4 + $0x160] sm:$0xff]  ;;  %v1256_v3 = vld [vmem:[#allocation4 + $0x148] sm:$0xff] }
  0x86   :  { %1093 = vmatpush2.bf16.msra.mxu0 %v2679_v4  ;;  %v2427_v4 = vcombine.high %v1255_v1, %v1259_v2 }
  0x87   :  { %1094 = vmatprep.subr.bf16.mxu0 %v2687_v5  ;;  %1134 = vmatpush2.bf16.msra.mxu1 %v2682_v6  ;;  %v1260_v5 = vld [vmem:[#allocation4 + $0x168] sm:$0xff]  ;;  %v1247_v6 = vld [vmem:[#allocation4 + $0x100] sm:$0xff] }
  0x88   :  { %1135 = vmatprep.subr.bf16.mxu1 %v2690_v7  ;;  %v1251_v7 = vld [vmem:[#allocation4 + $0x120] sm:$0xff] }
  0x8a   :  { %1095 = vmatpush2.bf16.msra.mxu0 %v2685_v8  ;;  %v2426_v8 = vcombine.low %v1255_v1, %v1259_v2 }
  0x8b   :  { %1096 = vmatprep.subr.bf16.mxu0 %v2693_v9  ;;  %1136 = vmatpush2.bf16.msra.mxu1 %v2688_v10  ;;  %v2429_v9 = vcombine.high %v1256_v3, %v1260_v5  ;;  %v1248_v10 = vld [vmem:[#allocation4 + $0x108] sm:$0xff] }
  0x8c   :  { %1137 = vmatprep.subr.bf16.mxu1 %v2696_v11  ;;  %v1252_v11 = vld [vmem:[#allocation4 + $0x128] sm:$0xff] }
  0x8e   :  { %1097 = vmatpush2.bf16.msra.mxu0 %v2691_v12  ;;  %v2428_v12 = vcombine.low %v1256_v3, %v1260_v5  ;;  %v1319_v3 = vld [vmem:[#allocation4 + $0x340] sm:$0xff]  ;;  %v1320_v5 = vld [vmem:[#allocation4 + $0x348] sm:$0xff] }
  0x8f   :  { %1098 = vmatprep.subr.bf16.mxu0 %v2699_v13  ;;  %1138 = vmatpush2.bf16.msra.mxu1 %v2694_v14  ;;  %v2419_v13 = vcombine.high %v1247_v6, %v1251_v7  ;;  %v2421_v14 = vcombine.high %v1248_v10, %v1252_v11 }
  0x90   :  { %1139 = vmatprep.subr.bf16.mxu1 %v2702_v15  ;;  %v1239_v15 = vld [vmem:[#allocation4 + $0xc0] sm:$0xff] }
  0x92   :  { %1099 = vmatpush2.bf16.msra.mxu0 %v2697_v16  ;;  %v1243_v16 = vld [vmem:[#allocation4 + $0xe0] sm:$0xff] }
  0x93   :  { %1100 = vmatprep.subr.bf16.mxu0 %v2705_v17  ;;  %1140 = vmatpush2.bf16.msra.mxu1 %v2700_v18  ;;  %v1240_v17 = vld [vmem:[#allocation4 + $0xc8] sm:$0xff] }
  0x94   :  { %1141 = vmatprep.subr.bf16.mxu1 %v2708_v19  ;;  %v1244_v18 = vld [vmem:[#allocation4 + $0xe8] sm:$0xff]  ;;  %v2418_v19 = vcombine.low %v1247_v6, %v1251_v7 }
  0x95   :  { %v1324_v7 = vld [vmem:[#allocation4 + $0x368] sm:$0xff] }
  0x96   :  { %1101 = vmatpush2.bf16.msra.mxu0 %v2703_v20  ;;  %v2420_v20 = vcombine.low %v1248_v10, %v1252_v11  ;;  %v2493_v10 = vcombine.high %v1320_v5, %v1324_v7  ;;  %v1311_v11 = vld [vmem:[#allocation4 + $0x300] sm:$0xff] }
  0x97   :  { %1102 = vmatprep.subr.bf16.mxu0 %v2711_v21  ;;  %1142 = vmatpush2.bf16.msra.mxu1 %v2706_v22  ;;  %v2411_v21 = vcombine.high %v1239_v15, %v1243_v16  ;;  %v2413_v22 = vcombine.high %v1240_v17, %v1244_v18 }
  0x98   :  { %1143 = vmatprep.subr.bf16.mxu1 %v2714_v23  ;;  %v1231_v23 = vld [vmem:[#allocation4 + $0x80] sm:$0xff] }
  0x9a   :  { %1103 = vmatpush2.bf16.msra.mxu0 %v2709_v24  ;;  %v1235_v24 = vld [vmem:[#allocation4 + $0xa0] sm:$0xff] }
  0x9b   :  { %1154 = vmatprep.subr.bf16.mxu0 %v2717_v25  ;;  %1144 = vmatpush2.bf16.msra.mxu1 %v2712_v26  ;;  %v1232_v25 = vld [vmem:[#allocation4 + $0x88] sm:$0xff] }
  0x9c   :  { %2025 = vmatprep.subr.bf16.mxu1 %v2443_v52  ;;  %v1236_v26 = vld [vmem:[#allocation4 + $0xa8] sm:$0xff]  ;;  %v1339_v52 = vld [vmem:[#allocation4 + $0x3e0] sm:$0xff] }
  0x9d   :  { %1105 = vmatmul.mubr.bf16.vlgmr.msra.gmra.mxu0 %v109_v27  ;;  %v2410_v27 = vcombine.low %v1239_v15, %v1243_v16  ;;  %v1316_v16 = vld [vmem:[#allocation4 + $0x328] sm:$0xff] }
  0x9e   :  { %1155 = vmatpush1.bf16.msra.mxu0 %v2715_v28  ;;  %1186 = vmatprep.mubr.bf16.mxu0 %v2795_v32  ;;  %v2412_v28 = vcombine.low %v1240_v17, %v1244_v18  ;;  %v1227_v32 = vld [vmem:[#allocation4 + $0x60] sm:$0xff] }
  0x9f   :  { %1146 = vmatmul.mubr.bf16.vlgmr.msra.gmra.mxu1 %v111_v29  ;;  %1156 = vmatprep.subr.bf16.mxu0 %v2721_v30  ;;  %v2403_v29 = vcombine.high %v1231_v23, %v1235_v24  ;;  %v2405_v30 = vcombine.high %v1232_v25, %v1236_v26  ;;  %v1303_v17 = vld [vmem:[#allocation4 + $0x2c0] sm:$0xff] }
  0xa0   :  { %2026 = vmatpush1.bf16.msra.mxu1 %v2442_v54  ;;  %v2507_v54 = vcombine.high %v1335_v51, %v1339_v52  ;;  %v1307_v18 = vld [vmem:[#allocation4 + $0x2e0] sm:$0xff] }
  0xa1   :  { %2027 = vmatprep.subr.bf16.mxu1 %v2435_v60  ;;  %v1331_v60 = vld [vmem:[#allocation4 + $0x3a0] sm:$0xff] }
  0xa2   :  { %1157 = vmatpush1.bf16.msra.mxu0 %v2719_v31  ;;  %v1223_v31 = vld [vmem:[#allocation4 + $0x40] sm:$0xff] }
  0xa3   :  { %1158 = vmatprep.subr.bf16.mxu0 %v2724_v33  ;;  %v1224_v33 = vld [vmem:[#allocation4 + $0x48] sm:$0xff] }
  0xa4   :  { %2028 = vmatpush1.bf16.msra.mxu1 %v2434_v62  ;;  %v2499_v62 = vcombine.high %v1327_v59, %v1331_v60 }
  0xa5   :  { %2029 = vmatprep.subr.bf16.mxu1 %v2427_v4  ;;  %v1323_v4 = vld [vmem:[#allocation4 + $0x360] sm:$0xff] }
  0xa6   :  { %1159 = vmatpush1.bf16.msra.mxu0 %v2722_v34  ;;  %v1228_v34 = vld [vmem:[#allocation4 + $0x68] sm:$0xff]  ;;  %v2491_v6 = vcombine.high %v1319_v3, %v1323_v4 }
  0xa7   :  { %1160 = vmatprep.subr.bf16.mxu0 %v2727_v35  ;;  %v2402_v35 = vcombine.low %v1231_v23, %v1235_v24  ;;  %v1308_v23 = vld [vmem:[#allocation4 + $0x2e8] sm:$0xff]  ;;  %v1295_v24 = vld [vmem:[#allocation4 + $0x280] sm:$0xff] }
  0xa8   :  { %2030 = vmatpush1.bf16.msra.mxu1 %v2426_v8  ;;  %v2490_v8 = vcombine.low %v1319_v3, %v1323_v4 }
  0xa9   :  { %2031 = vmatprep.subr.bf16.mxu1 %v2419_v13  ;;  %v1312_v13 = vld [vmem:[#allocation4 + $0x308] sm:$0xff] }
  0xaa   :  { %1161 = vmatpush1.bf16.msra.mxu0 %v2725_v36  ;;  %v2404_v36 = vcombine.low %v1232_v25, %v1236_v26  ;;  %v1299_v26 = vld [vmem:[#allocation4 + $0x2a0] sm:$0xff] }
  0xab   :  { %1162 = vmatprep.subr.bf16.mxu0 %v2730_v37  ;;  %v2395_v37 = vcombine.high %v1223_v31, %v1227_v32 }
  0xac   :  { %2032 = vmatpush1.bf16.msra.mxu1 %v2418_v19  ;;  %v2484_v19 = vcombine.low %v1312_v13, %v1316_v16 }
  0xad   :  { %2033 = vmatprep.subr.bf16.mxu1 %v2411_v21  ;;  %v2475_v21 = vcombine.high %v1303_v17, %v1307_v18 }
  0xae   :  { %1163 = vmatpush1.bf16.msra.mxu0 %v2728_v38  ;;  %v2397_v38 = vcombine.high %v1224_v33, %v1228_v34 }
  0xaf   :  { %1164 = vmatprep.subr.bf16.mxu0 %v2733_v39  ;;  %v1215_v39 = vld [vmem:[#allocation4] sm:$0xff] }
  0xb0   :  { %2034 = vmatpush1.bf16.msra.mxu1 %v2410_v27  ;;  %v1296_v27 = vld [vmem:[#allocation4 + $0x288] sm:$0xff] }
  0xb1   :  { %2035 = vmatprep.subr.bf16.mxu1 %v2403_v29  ;;  %v2474_v29 = vcombine.low %v1303_v17, %v1307_v18 }
  0xb2   :  { %1165 = vmatpush1.bf16.msra.mxu0 %v2731_v40  ;;  %v1219_v40 = vld [vmem:[#allocation4 + $0x20] sm:$0xff] }
  0xb3   :  { %1166 = vmatprep.subr.bf16.mxu0 %v2736_v41  ;;  %v1216_v41 = vld [vmem:[#allocation4 + $0x8] sm:$0xff]  ;;  %v2387_v46 = vcombine.high %v1215_v39, %v1219_v40  ;;  %v2386_v49 = vcombine.low %v1215_v39, %v1219_v40 }
  0xb4   :  { %2036 = vmatpush1.bf16.msra.mxu1 %v2402_v35  ;;  %v1288_v35 = vld [vmem:[#allocation4 + $0x248] sm:$0xff] }
  0xb5   :  { %2037 = vmatprep.subr.bf16.mxu1 %v2395_v37  ;;  %v2466_v37 = vcombine.low %v1295_v24, %v1299_v26 }
  0xb6   :  { %1167 = vmatpush1.bf16.msra.mxu0 %v2734_v42  ;;  %v1220_v42 = vld [vmem:[#allocation4 + $0x28] sm:$0xff] }
  0xb7   :  { %1168 = vmatprep.subr.bf16.mxu0 %v2739_v44  ;;  %v2394_v44 = vcombine.low %v1223_v31, %v1227_v32  ;;  %v2388_v50 = vcombine.low %v1216_v41, %v1220_v42  ;;  %v2467_v31 = vcombine.high %v1295_v24, %v1299_v26 }
  0xb9   :  { %2038 = vmatpush1.bf16.msra.mxu1 %v2394_v44  ;;  %v1280_v44 = vld [vmem:[#allocation4 + $0x208] sm:$0xff] }
  0xba   :  { %1169 = vmatpush1.bf16.msra.mxu0 %v2737_v45  ;;  %v2396_v45 = vcombine.low %v1224_v33, %v1228_v34  ;;  %2039 = vmatprep.subr.bf16.mxu1 %v2387_v46  ;;  %v1287_v33 = vld [vmem:[#allocation4 + $0x240] sm:$0xff] }
  0xbb   :  { %2066 = vmatprep.subr.bf16.mxu0 %v2445_v56  ;;  %v2506_v56 = vcombine.low %v1335_v51, %v1339_v52  ;;  %v1291_v34 = vld [vmem:[#allocation4 + $0x260] sm:$0xff] }
  0xbc   :  { %v2459_v39 = vcombine.high %v1287_v33, %v1291_v34  ;;  %v2458_v46 = vcombine.low %v1287_v33, %v1291_v34  ;;  %v258_v51 = vld [vmem:[%s2924_s2] sm:$0x3] }
  0xbd   :  { %1187 = vmatmul.mubr.bf16.vlgmr.msra.gmra.mxu0 %v113_v47  ;;  %v2389_v47 = vcombine.high %v1216_v41, %v1220_v42  ;;  %2040 = vmatpush1.bf16.msra.mxu1 %v2386_v49  ;;  %v1279_v41 = vld [vmem:[#allocation4 + $0x200] sm:$0xff] }
  0xbe   :  { %2067 = vmatpush1.bf16.msra.mxu0 %v2444_v55  ;;  %v1340_v55 = vld [vmem:[#allocation4 + $0x3e8] sm:$0xff]  ;;  %2041 = vmatprep.subr.bf16.mxu1 %v2507_v54  ;;  %v1283_v42 = vld [vmem:[#allocation4 + $0x220] sm:$0xff] }
  0xbf   :  { %2068 = vmatprep.subr.bf16.mxu0 %v2437_v0  ;;  %v2508_v57 = vcombine.low %v1336_v53, %v1340_v55  ;;  %v2509_v58 = vcombine.high %v1336_v53, %v1340_v55  ;;  %v2498_v0 = vcombine.low %v1327_v59, %v1331_v60  ;;  %v266_v53 = vsub.s32 1, %v2832_v43  ;;  %v2871_v59 = vld [vmem:[#allocation4 + $0x1d0] sm:$0xff] }
  0xc0   :  { %v2450_v54 = vcombine.low %v1279_v41, %v1283_v42  ;;  %v2873_v60 = vld [vmem:[#allocation4 + $0x1f0] sm:$0xff] }
  0xc1   :  { %2042 = vmatpush2.bf16.msra.mxu1 %v2506_v56  ;;  %v2446_v3 = vcombine.low %v2871_v59, %v2873_v60 }
  0xc2   :  { %2069 = vmatpush1.bf16.msra.mxu0 %v2436_v63  ;;  %v1332_v63 = vld [vmem:[#allocation4 + $0x3a8] sm:$0xff]  ;;  %2043 = vmatprep.subr.bf16.mxu1 %v2499_v62 }
  0xc3   :  { %2070 = vmatprep.subr.bf16.mxu0 %v2429_v9  ;;  %v2500_v1 = vcombine.low %v1328_v61, %v1332_v63  ;;  %v2501_v2 = vcombine.high %v1328_v61, %v1332_v63  ;;  %v2492_v9 = vcombine.low %v1320_v5, %v1324_v7  ;;  %v2875_v61 = vld [vmem:[#allocation4 + $0x1d8] sm:$0xff]  ;;  %v2447_v63 = vcombine.high %v2871_v59, %v2873_v60 }
  0xc5   :  { %2044 = vmatpush2.bf16.msra.mxu1 %v2498_v0  ;;  %v2879_v0 = vld [vmem:[#allocation4 + $0x1f8] sm:$0xff] }
  0xc6   :  { %2071 = vmatpush1.bf16.msra.mxu0 %v2428_v12  ;;  %2045 = vmatprep.subr.bf16.mxu1 %v2491_v6  ;;  %v1315_v12 = vld [vmem:[#allocation4 + $0x320] sm:$0xff]  ;;  %v2448_v4 = vcombine.low %v2875_v61, %v2879_v0  ;;  %v2449_v5 = vcombine.high %v2875_v61, %v2879_v0 }
  0xc7   :  { %2072 = vmatprep.subr.bf16.mxu0 %v2421_v14  ;;  %v2482_v14 = vcombine.low %v1311_v11, %v1315_v12  ;;  %v2483_v15 = vcombine.high %v1311_v11, %v1315_v12 }
  0xc9   :  { %2046 = vmatpush2.bf16.msra.mxu1 %v2490_v8 }
  0xca   :  { %2073 = vmatpush1.bf16.msra.mxu0 %v2420_v20  ;;  %v2485_v20 = vcombine.high %v1312_v13, %v1316_v16  ;;  %2047 = vmatprep.subr.bf16.mxu1 %v2483_v15 }
  0xcb   :  { %2074 = vmatprep.subr.bf16.mxu0 %v2413_v22  ;;  %v1304_v22 = vld [vmem:[#allocation4 + $0x2c8] sm:$0xff] }
  0xcc   :  { %v2477_v25 = vcombine.high %v1304_v22, %v1308_v23 }
  0xcd   :  { %2048 = vmatpush2.bf16.msra.mxu1 %v2482_v14 }
  0xce   :  { %2075 = vmatpush1.bf16.msra.mxu0 %v2412_v28  ;;  %v1300_v28 = vld [vmem:[#allocation4 + $0x2a8] sm:$0xff]  ;;  %2049 = vmatprep.subr.bf16.mxu1 %v2475_v21 }
  0xcf   :  { %2076 = vmatprep.subr.bf16.mxu0 %v2405_v30  ;;  %v2476_v30 = vcombine.low %v1304_v22, %v1308_v23  ;;  %v2469_v32 = vcombine.high %v1296_v27, %v1300_v28 }
  0xd1   :  { %2050 = vmatpush2.bf16.msra.mxu1 %v2474_v29 }
  0xd2   :  { %2077 = vmatpush1.bf16.msra.mxu0 %v2404_v36  ;;  %v1292_v36 = vld [vmem:[#allocation4 + $0x268] sm:$0xff]  ;;  %2051 = vmatprep.subr.bf16.mxu1 %v2467_v31 }
  0xd3   :  { %2078 = vmatprep.subr.bf16.mxu0 %v2397_v38  ;;  %v2468_v38 = vcombine.low %v1296_v27, %v1300_v28  ;;  %v2461_v40 = vcombine.high %v1288_v35, %v1292_v36  ;;  %v2460_v49 = vcombine.low %v1288_v35, %v1292_v36 }
  0xd5   :  { %2052 = vmatpush2.bf16.msra.mxu1 %v2466_v37 }
  0xd6   :  { %2079 = vmatpush1.bf16.msra.mxu0 %v2396_v45  ;;  %v1284_v45 = vld [vmem:[#allocation4 + $0x228] sm:$0xff]  ;;  %2053 = vmatprep.subr.bf16.mxu1 %v2459_v39 }
  0xd7   :  { %2080 = vmatprep.subr.bf16.mxu0 %v2389_v47  ;;  %v262_v47 = vsub.s32 0, %v2832_v43  ;;  %v2453_v52 = vcombine.high %v1280_v44, %v1284_v45  ;;  %v2452_v56 = vcombine.low %v1280_v44, %v1284_v45 }
  0xd9   :  { %2054 = vmatpush2.bf16.msra.mxu1 %v2458_v46  ;;  %v263_v55 = vrot.slane %v258_v51, %v262_v47 }
  0xda   :  { %2081 = vmatpush1.bf16.msra.mxu0 %v2388_v50  ;;  %v2451_v50 = vcombine.high %v1279_v41, %v1283_v42 }
  0xdb   :  { %2082 = vmatprep.subr.bf16.mxu0 %v2509_v58 }
  0xdc   :  { %2055 = vmatprep.subr.bf16.mxu1 %v2451_v50 }
  0xdd   :  { %2056 = vmatpush2.bf16.msra.mxu1 %v2450_v54  ;;  %v1265_v54 = vld [vmem:[#allocation4 + $0x190] sm:$0xff] }
  0xde   :  { %2083 = vmatpush2.bf16.msra.mxu0 %v2508_v57  ;;  %v267_v57 = vrot.slane %v258_v51, %v266_v53  ;;  %2107 = vmatprep.subr.bf16.mxu1 %v2447_v63  ;;  %v1257_v63 = vld [vmem:[#allocation4 + $0x150] sm:$0xff] }
  0xdf   :  { %2084 = vmatprep.subr.bf16.mxu0 %v2501_v2 }
  0xe2   :  { %2085 = vmatpush2.bf16.msra.mxu0 %v2500_v1 }
  0xe3   :  { %2086 = vmatprep.subr.bf16.mxu0 %v2493_v10 }
  0xe6   :  { %2087 = vmatpush2.bf16.msra.mxu0 %v2492_v9 }
  0xe7   :  { %2088 = vmatprep.subr.bf16.mxu0 %v2485_v20 }
  0xea   :  { %2089 = vmatpush2.bf16.msra.mxu0 %v2484_v19 }
  0xeb   :  { %2090 = vmatprep.subr.bf16.mxu0 %v2477_v25 }
  0xee   :  { %2091 = vmatpush2.bf16.msra.mxu0 %v2476_v30 }
  0xef   :  { %2092 = vmatprep.subr.bf16.mxu0 %v2469_v32 }
  0xf2   :  { %2093 = vmatpush2.bf16.msra.mxu0 %v2468_v38 }
  0xf3   :  { %2094 = vmatprep.subr.bf16.mxu0 %v2461_v40 }
  0xf6   :  { %2095 = vmatpush2.bf16.msra.mxu0 %v2460_v49 }
  0xf7   :  { %2096 = vmatprep.subr.bf16.mxu0 %v2453_v52 }
  0xfa   :  { %2097 = vmatpush2.bf16.msra.mxu0 %v2452_v56  ;;  %v1266_v56 = vld [vmem:[#allocation4 + $0x198] sm:$0xff] }
  0xfb   :  { %2148 = vmatprep.subr.bf16.mxu0 %v2449_v5  ;;  %v1261_v5 = vld [vmem:[#allocation4 + $0x170] sm:$0xff] }
  0xfc   :  { %v2430_v59 = vcombine.low %v1257_v63, %v1261_v5 }
 0x11d   :  { %v1024_v58 = vpop.f32.mrf.mxu0 }
 0x11e   :  { %v1025_v62 = vadd.f32 %v1024_v58, %v263_v55  ;;  %v1065_v2 = vpop.f32.mrf.mxu1  ;;  %v1269_v55 = vld [vmem:[#allocation4 + $0x1b0] sm:$0xff] }
 0x11f   :  { %v1026_v1 = vpop.f32.mrf.mxu0 }
 0x120   :  { %v1027_v6 = vadd.f32 %v1026_v1, %v267_v57  ;;  %v1066_v7 = vadd.f32 %v1065_v2, %v1025_v62  ;;  %v1067_v9 = vpop.f32.mrf.mxu1  ;;  %v1270_v57 = vld [vmem:[#allocation4 + $0x1b8] sm:$0xff]  ;;  %v2439_v1 = vcombine.high %v1265_v54, %v1269_v55 }
 0x121   :  { %v1028_v8 = vpop.f32.mrf.mxu0  ;;  %v2441_v2 = vcombine.high %v1266_v56, %v1270_v57 }
 0x122   :  { %v1068_v10 = vadd.f32 %v1067_v9, %v1027_v6  ;;  %v1069_v12 = vpop.f32.mrf.mxu1  ;;  %v1258_v6 = vld [vmem:[#allocation4 + $0x158] sm:$0xff]  ;;  %v2438_v8 = vcombine.low %v1265_v54, %v1269_v55  ;;  %v2440_v9 = vcombine.low %v1266_v56, %v1270_v57 }
 0x123   :  { %v1029_v11 = vpop.f32.mrf.mxu0  ;;  %v1249_v12 = vld [vmem:[#allocation4 + $0x110] sm:$0xff] }
 0x124   :  { %v1070_v13 = vpop.f32.mrf.mxu1 }
 0x125   :  { %v1253_v13 = vld [vmem:[#allocation4 + $0x130] sm:$0xff] }
 0x126   :  { %v2423_v61 = vcombine.high %v1249_v12, %v1253_v13 }
 0x15d   :  { %v1106_v14 = vpop.f32.mrf.mxu0 }
 0x15e   :  { %v1107_v22 = vadd.f32 %v1106_v14, %v1066_v7  ;;  %v1262_v7 = vld [vmem:[#allocation4 + $0x178] sm:$0xff] }
 0x15f   :  { %v1108_v15 = vpop.f32.mrf.mxu0  ;;  %v1147_v16 = vpop.f32.mrf.mxu1  ;;  %v2433_v11 = vcombine.high %v1258_v6, %v1262_v7  ;;  %v1250_v14 = vld [vmem:[#allocation4 + $0x118] sm:$0xff]  ;;  %v2432_v60 = vcombine.low %v1258_v6, %v1262_v7 }
 0x160   :  { %v1109_v23 = vadd.f32 %v1108_v15, %v1068_v10  ;;  %v1148_v24 = vadd.f32 %v1147_v16, %v1107_v22  ;;  %v2431_v10 = vcombine.high %v1257_v63, %v1261_v5  ;;  %v1254_v15 = vld [vmem:[#allocation4 + $0x138] sm:$0xff]  ;;  %v1233_v22 = vld [vmem:[#allocation4 + $0x90] sm:$0xff] }
 0x161   :  { %v1110_v17 = vpop.f32.mrf.mxu0  ;;  %v1149_v18 = vpop.f32.mrf.mxu1  ;;  %v2425_v0 = vcombine.high %v1250_v14, %v1254_v15  ;;  %v1242_v16 = vld [vmem:[#allocation4 + $0xd8] sm:$0xff]  ;;  %v1333_v63 = vld [vmem:[#allocation4 + $0x3b0] sm:$0xff] }
 0x162   :  { %v1150_v26 = vadd.f32 %v1149_v18, %v1109_v23  ;;  %v1246_v17 = vld [vmem:[#allocation4 + $0xf8] sm:$0xff]  ;;  %v2422_v18 = vcombine.low %v1249_v12, %v1253_v13  ;;  %v1237_v23 = vld [vmem:[#allocation4 + $0xb0] sm:$0xff] }
 0x163   :  { %v1111_v19 = vpop.f32.mrf.mxu0  ;;  %v1151_v20 = vpop.f32.mrf.mxu1  ;;  %v1326_v12 = vld [vmem:[#allocation4 + $0x378] sm:$0xff] }
 0x164   :  { %v2424_v19 = vcombine.low %v1250_v14, %v1254_v15 }
 0x165   :  { %v1152_v21 = vpop.f32.mrf.mxu1 }
 0x166   :  { %v2417_v21 = vcombine.high %v1242_v16, %v1246_v17 }
 0x17d   :  { %v1188_v25 = vpop.f32.mrf.mxu0 }
 0x17e   :  { %v1189_v27 = vadd.f32 %v1188_v25, %v1148_v24  ;;  %v1234_v24 = vld [vmem:[#allocation4 + $0x98] sm:$0xff] }
 0x17f   :  { %v1190_v28 = vpop.f32.mrf.mxu0  ;;  %v1238_v25 = vld [vmem:[#allocation4 + $0xb8] sm:$0xff] }
 0x180   :  { %v1197_v29 = vmul.f32 0.044715, %v1189_v27  ;;  %v1191_v30 = vadd.f32 %v1190_v28, %v1150_v26  ;;  %v1195_v46 = vmul.f32 0.5, %v1189_v27  ;;  %v2407_v28 = vcombine.high %v1233_v22, %v1237_v23 }
 0x181   :  { %v1192_v31 = vpop.f32.mrf.mxu0 }
 0x182   :  { %v1199_v32 = vmul.f32 %v1197_v29, %v1189_v27  ;;  %v1198_v33 = vmul.f32 0.044715, %v1191_v30  ;;  %v1196_v49 = vmul.f32 0.5, %v1191_v30  ;;  %v2409_v29 = vcombine.high %v1234_v24, %v1238_v25  ;;  %v1229_v31 = vld [vmem:[#allocation4 + $0x70] sm:$0xff] }
 0x183   :  { %v1193_v34 = vpop.f32.mrf.mxu0 }
 0x184   :  { %v1201_v35 = vmul.f32 %v1199_v32, %v1189_v27  ;;  %v1200_v36 = vmul.f32 %v1198_v33, %v1191_v30  ;;  %v1226_v32 = vld [vmem:[#allocation4 + $0x58] sm:$0xff]  ;;  %v2406_v34 = vcombine.low %v1233_v22, %v1237_v23 }
 0x185   :  { %v1230_v33 = vld [vmem:[#allocation4 + $0x78] sm:$0xff] }
 0x186   :  { %v1203_v37 = vadd.f32 %v1201_v35, %v1189_v27  ;;  %v1202_v38 = vmul.f32 %v1200_v36, %v1191_v30  ;;  %v2416_v27 = vcombine.low %v1242_v16, %v1246_v17  ;;  %v2408_v35 = vcombine.low %v1234_v24, %v1238_v25  ;;  %v1310_v22 = vld [vmem:[#allocation4 + $0x2f8] sm:$0xff] }
 0x188   :  { %v1205_v39 = vmul.f32 0.7978846, %v1203_v37  ;;  %v1204_v40 = vadd.f32 %v1202_v38, %v1191_v30  ;;  %v1225_v30 = vld [vmem:[#allocation4 + $0x50] sm:$0xff]  ;;  %v2401_v37 = vcombine.high %v1226_v32, %v1230_v33 }
 0x189   :  { %v2399_v36 = vcombine.high %v1225_v30, %v1229_v31  ;;  %v1217_v38 = vld [vmem:[#allocation4 + $0x10] sm:$0xff] }
 0x18a   :  { %v1206_v41 = vmul.f32 0.7978846, %v1204_v40  ;;  %2740 = vtanh.f32 %v1205_v39  ;;  %v1221_v39 = vld [vmem:[#allocation4 + $0x30] sm:$0xff]  ;;  %v1218_v40 = vld [vmem:[#allocation4 + $0x18] sm:$0xff] }
 0x18b   :  { %v2390_v54 = vcombine.low %v1217_v38, %v1221_v39 }
 0x18c   :  { %2742 = vtanh.f32 %v1206_v41  ;;  %v1222_v41 = vld [vmem:[#allocation4 + $0x38] sm:$0xff] }
 0x18d   :  { %v2392_v55 = vcombine.low %v1218_v40, %v1222_v41 }
 0x197   :  { %v2741_v42 = vpop.eup %2740 }
 0x198   :  { %v1209_v44 = vadd.f32 1.0, %v2741_v42  ;;  %v2398_v42 = vcombine.low %v1225_v30, %v1229_v31  ;;  %v1302_v30 = vld [vmem:[#allocation4 + $0x2b8] sm:$0xff] }
 0x199   :  { %v2743_v45 = vpop.eup %2742 }
 0x19a   :  { %v1210_v50 = vadd.f32 1.0, %v2743_v45  ;;  %v1211_v51 = vmul.f32 %v1209_v44, %v1195_v46  ;;  %v2400_v44 = vcombine.low %v1226_v32, %v1230_v33  ;;  %v2391_v45 = vcombine.high %v1217_v38, %v1221_v39  ;;  %v1294_v38 = vld [vmem:[#allocation4 + $0x278] sm:$0xff] }
 0x19b   :  { %v2393_v46 = vcombine.high %v1218_v40, %v1222_v41 }
 0x19c   :  { %v1212_v52 = vmul.f32 %v1210_v50, %v1196_v49  ;;  %v2887_v62 = vpack.c.bf16 %v1211_v51, %v1211_v51  ;;  %v1337_v49 = vld [vmem:[#allocation4 + $0x3d0] sm:$0xff]  ;;  %v1338_v51 = vld [vmem:[#allocation4 + $0x3d8] sm:$0xff] }
 0x19d   :  { %v1341_v50 = vld [vmem:[#allocation4 + $0x3f0] sm:$0xff] }
 0x19e   :  { %v1214_v58 = vpack.c.bf16 %v1212_v52, %v1212_v52  ;;  %v1342_v52 = vld [vmem:[#allocation4 + $0x3f8] sm:$0xff]  ;;  %v2511_v56 = vcombine.high %v1337_v49, %v1341_v50  ;;  %v2510_v5 = vcombine.low %v1337_v49, %v1341_v50 }
 0x19f   :  { %v2513_v57 = vcombine.high %v1338_v51, %v1342_v52  ;;  %v2512_v6 = vcombine.low %v1338_v51, %v1342_v52  ;;  %v1286_v49 = vld [vmem:[#allocation4 + $0x238] sm:$0xff] }
 0x1a0   :  { %2057 = vmatprep.mubr.bf16.mxu1 %v1214_v58  ;;  %2098 = vmatprep.mubr.bf16.mxu0 %v1214_v58 }
 0x1a1   :  { %2058 = vmatmul.mubr.bf16.vlgmr.msra.gmra.mxu1 %v2887_v62  ;;  %2099 = vmatmul.mubr.bf16.vlgmr.msra.gmra.mxu0 %v2887_v62 }
 0x1a2   :  { %2108 = vmatpush1.bf16.msra.mxu1 %v2446_v3  ;;  %2149 = vmatpush1.bf16.msra.mxu0 %v2448_v4  ;;  %v1241_v3 = vld [vmem:[#allocation4 + $0xd0] sm:$0xff] }
 0x1a3   :  { %2139 = vmatprep.mubr.bf16.mxu1 %v1214_v58  ;;  %2180 = vmatprep.mubr.bf16.mxu0 %v1214_v58  ;;  %v1245_v4 = vld [vmem:[#allocation4 + $0xf0] sm:$0xff] }
 0x1a4   :  { %2109 = vmatprep.subr.bf16.mxu1 %v2439_v1  ;;  %2150 = vmatprep.subr.bf16.mxu0 %v2441_v2  ;;  %v2415_v20 = vcombine.high %v1241_v3, %v1245_v4  ;;  %v2414_v26 = vcombine.low %v1241_v3, %v1245_v4  ;;  %v1329_v58 = vld [vmem:[#allocation4 + $0x390] sm:$0xff]  ;;  %v1330_v1 = vld [vmem:[#allocation4 + $0x398] sm:$0xff] }
 0x1a5   :  { %v1334_v2 = vld [vmem:[#allocation4 + $0x3b8] sm:$0xff]  ;;  %v2503_v7 = vcombine.high %v1329_v58, %v1333_v63  ;;  %v2502_v13 = vcombine.low %v1329_v58, %v1333_v63  ;;  %v1359_v58 = vsub.s32 3, %v2832_v43  ;;  %v1343_v63 = vld [vmem:[%s2926_s4] sm:$0xff] }
 0x1a6   :  { %2110 = vmatpush1.bf16.msra.mxu1 %v2438_v8  ;;  %2151 = vmatpush1.bf16.msra.mxu0 %v2440_v9  ;;  %v2505_v8 = vcombine.high %v1330_v1, %v1334_v2  ;;  %v1321_v9 = vld [vmem:[#allocation4 + $0x350] sm:$0xff]  ;;  %v2504_v14 = vcombine.low %v1330_v1, %v1334_v2  ;;  %v1318_v3 = vld [vmem:[#allocation4 + $0x338] sm:$0xff]  ;;  %v1348_v1 = vrot.slane %v1343_v63, %v262_v47 }
 0x1a7   :  { %2111 = vmatprep.subr.bf16.mxu1 %v2431_v10  ;;  %2152 = vmatprep.subr.bf16.mxu0 %v2433_v11  ;;  %v1325_v10 = vld [vmem:[#allocation4 + $0x370] sm:$0xff]  ;;  %v1322_v11 = vld [vmem:[#allocation4 + $0x358] sm:$0xff] }
 0x1a8   :  { %v2495_v15 = vcombine.high %v1321_v9, %v1325_v10  ;;  %v2494_v4 = vcombine.low %v1321_v9, %v1325_v10  ;;  %v2496_v16 = vcombine.low %v1322_v11, %v1326_v12 }
 0x1aa   :  { %2112 = vmatpush1.bf16.msra.mxu1 %v2430_v59  ;;  %2153 = vmatpush1.bf16.msra.mxu0 %v2432_v60  ;;  %v2497_v59 = vcombine.high %v1322_v11, %v1326_v12  ;;  %v1313_v60 = vld [vmem:[#allocation4 + $0x310] sm:$0xff] }
 0x1ab   :  { %2113 = vmatprep.subr.bf16.mxu1 %v2423_v61  ;;  %2154 = vmatprep.subr.bf16.mxu0 %v2425_v0  ;;  %v1317_v61 = vld [vmem:[#allocation4 + $0x330] sm:$0xff]  ;;  %v1314_v0 = vld [vmem:[#allocation4 + $0x318] sm:$0xff] }
 0x1ac   :  { %v2487_v17 = vcombine.high %v1313_v60, %v1317_v61  ;;  %v2486_v23 = vcombine.low %v1313_v60, %v1317_v61  ;;  %v2488_v24 = vcombine.low %v1314_v0, %v1318_v3 }
 0x1ae   :  { %2114 = vmatpush1.bf16.msra.mxu1 %v2422_v18  ;;  %2155 = vmatpush1.bf16.msra.mxu0 %v2424_v19  ;;  %v2489_v18 = vcombine.high %v1314_v0, %v1318_v3  ;;  %v1305_v19 = vld [vmem:[#allocation4 + $0x2d0] sm:$0xff] }
 0x1af   :  { %2115 = vmatprep.subr.bf16.mxu1 %v2415_v20  ;;  %2156 = vmatprep.subr.bf16.mxu0 %v2417_v21  ;;  %v1309_v20 = vld [vmem:[#allocation4 + $0x2f0] sm:$0xff]  ;;  %v1306_v21 = vld [vmem:[#allocation4 + $0x2d8] sm:$0xff] }
 0x1b0   :  { %v2479_v25 = vcombine.high %v1305_v19, %v1309_v20  ;;  %v2478_v31 = vcombine.low %v1305_v19, %v1309_v20  ;;  %v2480_v32 = vcombine.low %v1306_v21, %v1310_v22 }
 0x1b2   :  { %2116 = vmatpush1.bf16.msra.mxu1 %v2414_v26  ;;  %2157 = vmatpush1.bf16.msra.mxu0 %v2416_v27  ;;  %v2481_v26 = vcombine.high %v1306_v21, %v1310_v22  ;;  %v1297_v27 = vld [vmem:[#allocation4 + $0x290] sm:$0xff] }
 0x1b3   :  { %2117 = vmatprep.subr.bf16.mxu1 %v2407_v28  ;;  %2158 = vmatprep.subr.bf16.mxu0 %v2409_v29  ;;  %v1301_v28 = vld [vmem:[#allocation4 + $0x2b0] sm:$0xff]  ;;  %v1298_v29 = vld [vmem:[#allocation4 + $0x298] sm:$0xff] }
 0x1b4   :  { %v2471_v33 = vcombine.high %v1297_v27, %v1301_v28  ;;  %v2470_v39 = vcombine.low %v1297_v27, %v1301_v28  ;;  %v2472_v40 = vcombine.low %v1298_v29, %v1302_v30 }
 0x1b6   :  { %2118 = vmatpush1.bf16.msra.mxu1 %v2406_v34  ;;  %2159 = vmatpush1.bf16.msra.mxu0 %v2408_v35  ;;  %v2473_v34 = vcombine.high %v1298_v29, %v1302_v30  ;;  %v1289_v35 = vld [vmem:[#allocation4 + $0x250] sm:$0xff] }
 0x1b7   :  { %2119 = vmatprep.subr.bf16.mxu1 %v2399_v36  ;;  %2160 = vmatprep.subr.bf16.mxu0 %v2401_v37  ;;  %v1293_v36 = vld [vmem:[#allocation4 + $0x270] sm:$0xff]  ;;  %v1290_v37 = vld [vmem:[#allocation4 + $0x258] sm:$0xff] }
 0x1b8   :  { %v2463_v41 = vcombine.high %v1289_v35, %v1293_v36  ;;  %v2462_v50 = vcombine.low %v1289_v35, %v1293_v36  ;;  %v2464_v51 = vcombine.low %v1290_v37, %v1294_v38 }
 0x1ba   :  { %2120 = vmatpush1.bf16.msra.mxu1 %v2398_v42  ;;  %2161 = vmatpush1.bf16.msra.mxu0 %v2400_v44  ;;  %v2465_v42 = vcombine.high %v1290_v37, %v1294_v38  ;;  %v1281_v44 = vld [vmem:[#allocation4 + $0x210] sm:$0xff] }
 0x1bb   :  { %2121 = vmatprep.subr.bf16.mxu1 %v2391_v45  ;;  %2162 = vmatprep.subr.bf16.mxu0 %v2393_v46  ;;  %v1285_v45 = vld [vmem:[#allocation4 + $0x230] sm:$0xff]  ;;  %v1282_v46 = vld [vmem:[#allocation4 + $0x218] sm:$0xff] }
 0x1bc   :  { %v2455_v52 = vcombine.high %v1281_v44, %v1285_v45 }
 0x1be   :  { %2122 = vmatpush1.bf16.msra.mxu1 %v2390_v54  ;;  %2163 = vmatpush1.bf16.msra.mxu0 %v2392_v55  ;;  %v2457_v54 = vcombine.high %v1282_v46, %v1286_v49  ;;  %v2454_v55 = vcombine.low %v1281_v44, %v1285_v45 }
 0x1bf   :  { %2123 = vmatprep.subr.bf16.mxu1 %v2511_v56  ;;  %2164 = vmatprep.subr.bf16.mxu0 %v2513_v57  ;;  %v2456_v56 = vcombine.low %v1282_v46, %v1286_v49  ;;  %v1355_v57 = vsub.s32 2, %v2832_v43 }
 0x1c1   :  { %v1356_v2 = vrot.slane %v1343_v63, %v1355_v57 }
 0x1c2   :  { %2124 = vmatpush2.bf16.msra.mxu1 %v2510_v5  ;;  %2165 = vmatpush2.bf16.msra.mxu0 %v2512_v6  ;;  %v1352_v5 = vrot.slane %v1343_v63, %v266_v53  ;;  %v1360_v6 = vrot.slane %v1343_v63, %v1359_v58 }
 0x1c3   :  { %2125 = vmatprep.subr.bf16.mxu1 %v2503_v7  ;;  %2166 = vmatprep.subr.bf16.mxu0 %v2505_v8 }
 0x1c6   :  { %2126 = vmatpush2.bf16.msra.mxu1 %v2502_v13  ;;  %2167 = vmatpush2.bf16.msra.mxu0 %v2504_v14 }
 0x1c7   :  { %2127 = vmatprep.subr.bf16.mxu1 %v2495_v15  ;;  %2168 = vmatprep.subr.bf16.mxu0 %v2497_v59 }
 0x1ca   :  { %2128 = vmatpush2.bf16.msra.mxu1 %v2494_v4  ;;  %2169 = vmatpush2.bf16.msra.mxu0 %v2496_v16  ;;  %v1363_v4 = vsub.s32 4, %v2832_v43  ;;  %v1371_v16 = vsub.s32 6, %v2832_v43 }
 0x1cb   :  { %2129 = vmatprep.subr.bf16.mxu1 %v2487_v17  ;;  %2170 = vmatprep.subr.bf16.mxu0 %v2489_v18  ;;  %v1367_v17 = vsub.s32 5, %v2832_v43  ;;  %v1375_v18 = vsub.s32 7, %v2832_v43 }
 0x1cc   :  { %v1364_v19 = vrot.slane %v1343_v63, %v1363_v4  ;;  %v1372_v20 = vrot.slane %v1343_v63, %v1371_v16 }
 0x1cd   :  { %v1368_v21 = vrot.slane %v1343_v63, %v1367_v17  ;;  %v1376_v22 = vrot.slane %v1343_v63, %v1375_v18 }
 0x1ce   :  { %2130 = vmatpush2.bf16.msra.mxu1 %v2486_v23  ;;  %2171 = vmatpush2.bf16.msra.mxu0 %v2488_v24 }
 0x1cf   :  { %2131 = vmatprep.subr.bf16.mxu1 %v2479_v25  ;;  %2172 = vmatprep.subr.bf16.mxu0 %v2481_v26 }
 0x1d2   :  { %2132 = vmatpush2.bf16.msra.mxu1 %v2478_v31  ;;  %2173 = vmatpush2.bf16.msra.mxu0 %v2480_v32 }
 0x1d3   :  { %2133 = vmatprep.subr.bf16.mxu1 %v2471_v33  ;;  %2174 = vmatprep.subr.bf16.mxu0 %v2473_v34 }
 0x1d6   :  { %2134 = vmatpush2.bf16.msra.mxu1 %v2470_v39  ;;  %2175 = vmatpush2.bf16.msra.mxu0 %v2472_v40 }
 0x1d7   :  { %2135 = vmatprep.subr.bf16.mxu1 %v2463_v41  ;;  %2176 = vmatprep.subr.bf16.mxu0 %v2465_v42 }
 0x1da   :  { %2136 = vmatpush2.bf16.msra.mxu1 %v2462_v50  ;;  %2177 = vmatpush2.bf16.msra.mxu0 %v2464_v51 }
 0x1db   :  { %2137 = vmatprep.subr.bf16.mxu1 %v2455_v52  ;;  %2178 = vmatprep.subr.bf16.mxu0 %v2457_v54 }
 0x1de   :  { %2138 = vmatpush2.bf16.msra.mxu1 %v2454_v55  ;;  %2179 = vmatpush2.bf16.msra.mxu0 %v2456_v56 }
 0x1e1   :  { %2140 = vmatmul.mubr.bf16.vlgmr.msra.gmra.mxu1 %v2887_v62  ;;  %2181 = vmatmul.mubr.bf16.vlgmr.msra.gmra.mxu0 %v2887_v62 }
 0x261   :  { %v2059_v7 = vpop.f32.mrf.mxu1  ;;  %v2100_v8 = vpop.f32.mrf.mxu0 }
 0x262   :  { %v2060_v10 = vadd.f32 %v2059_v7, %v1348_v1  ;;  %v2101_v11 = vadd.f32 %v2100_v8, %v1356_v2 }
 0x263   :  { %v2061_v9 = vpop.f32.mrf.mxu1  ;;  %v2102_v62 = vpop.f32.mrf.mxu0 }
 0x264   :  { %v2062_v12 = vadd.f32 %v2061_v9, %v1352_v5  ;;  %v2103_v13 = vadd.f32 %v2102_v62, %v1360_v6 }
 0x265   :  { %v2063_v14 = vpop.f32.mrf.mxu1  ;;  %v2104_v15 = vpop.f32.mrf.mxu0 }
 0x266   :  { %v2197_v59 = vcombine.low %v2060_v10, %v2062_v12  ;;  %v2198_v60 = vcombine.low %v2101_v11, %v2103_v13 }
 0x267   :  { %v2064_v61 = vpop.f32.mrf.mxu1  ;;  %v2105_v0 = vpop.f32.mrf.mxu0 }
 0x268   :  { %v2205_v47 = vrot.slane %v2197_v59, %v2835_v48  ;;  %v2212_v3 = vrot.slane %v2198_v60, %v2835_v48 }
 0x26a   :  { %v2213_v53 = vcombine.low %v2205_v47, %v2212_v3 }
 0x26c   :  { %2233 = vst [vmem:[%s2927_s5] sm:$0xff] %v2213_v53 }
 0x2a1   :  { %v2141_v23 = vpop.f32.mrf.mxu1  ;;  %v2182_v24 = vpop.f32.mrf.mxu0 }
 0x2a2   :  { %v2142_v27 = vadd.f32 %v2141_v23, %v1364_v19  ;;  %v2183_v28 = vadd.f32 %v2182_v24, %v1372_v20 }
 0x2a3   :  { %v2143_v25 = vpop.f32.mrf.mxu1  ;;  %v2184_v26 = vpop.f32.mrf.mxu0 }
 0x2a4   :  { %v2144_v29 = vadd.f32 %v2143_v25, %v1368_v21  ;;  %v2185_v30 = vadd.f32 %v2184_v26, %v1376_v22 }
 0x2a5   :  { %v2145_v31 = vpop.f32.mrf.mxu1  ;;  %v2186_v32 = vpop.f32.mrf.mxu0 }
 0x2a6   :  { %v2214_v33 = vcombine.low %v2142_v27, %v2144_v29  ;;  %v2215_v34 = vcombine.low %v2183_v28, %v2185_v30 }
 0x2a7   :  { %v2146_v35 = vpop.f32.mrf.mxu1  ;;  %v2187_v36 = vpop.f32.mrf.mxu0 }
 0x2a8   :  { %v2222_v43 = vrot.slane %v2214_v33, %v2835_v48  ;;  %v2229_v37 = vrot.slane %v2215_v34, %v2835_v48 }
 0x2aa   :  { %v2230_v38 = vcombine.low %v2222_v43, %v2229_v37 }
 0x2ac   :  { %2234 = vst [vmem:[%s2927_s5 + $0x8] sm:$0xff] %v2230_v38 }
 0x2ad   :  { %2239 = vsyncpa [#allocation3], 1 }
 0x2ae   :  { %2240 = vsyncpa [#allocation5], 1 }

</bundles_post_ra>
